<compile_context>
chip_gen: v6e
topology: v6e:2x2x1
jax: 0.10.0
libtpu: 0.0.40
codegen_flags: <defaults>
</compile_context>

<pallas_src>
import functools

import jax
import jax.numpy as jnp
from jax.experimental import pallas as pl
from jax.experimental.pallas import tpu as pltpu


# ----------------------------- config -------------------------------------
VOCAB = 100
HIDDEN = 32
NUM_LAYERS = 2
NUM_HEADS = 2
HEAD_DIM = HIDDEN // NUM_HEADS
INTERMEDIATE = 64
MAX_POS = 16
TYPE_VOCAB = 2
NUM_LABELS = 2
LN_EPS = 1e-12

BATCH = 2
SEQ = 8

# ---- packed bias / LayerNorm parameter vector: row layout ------------------
PV_ELN_G = 0
PV_ELN_B = 1
PV_QKV_B = 2                         # rows 2..3   (width 3*HIDDEN)
PV_BO = PV_QKV_B + NUM_LAYERS        # rows 4..5
PV_LN1_G = PV_BO + NUM_LAYERS        # rows 6..7
PV_LN1_B = PV_LN1_G + NUM_LAYERS     # rows 8..9
PV_B1 = PV_LN1_B + NUM_LAYERS        # rows 10..11 (width INTERMEDIATE)
PV_B2 = PV_B1 + NUM_LAYERS           # rows 12..13
PV_LN2_G = PV_B2 + NUM_LAYERS        # rows 14..15
PV_LN2_B = PV_LN2_G + NUM_LAYERS     # rows 16..17
PV_POOL_B = PV_LN2_B + NUM_LAYERS    # row 18
PV_CLS_B = PV_POOL_B + 1             # row 19
PV_ROWS = PV_CLS_B + 1               # 20
PV_WIDTH = 128


# --------------------------- pallas kernel ----------------------------------
def _full_spec(shape):
    # Full-array block, grid=(1,): every tensor here is tiny and fits VMEM.
    ndim = len(shape)
    return pl.BlockSpec(shape, lambda i: (0,) * ndim)


def _fused_forward_kernel(
    # activations / small per-call inputs
    emb_ref, mask_ref, onehot_ref,
    # packed weights (bf16) and packed biases/LN params (f32)
    wcat_ref, w2_ref, wpc_ref, pvec_ref,
    # outputs
    logits_ref, loss_ref,
    # scratch
    h_scr,
    *, batch, seq,
):
    f32 = jnp.float32
    bf16 = jnp.bfloat16

    def mm(a, b):
        # a @ b with bf16 MXU operands, f32 accumulation.
        return jax.lax.dot_general(
            a.astype(bf16), b.astype(bf16),
            (((a.ndim - 1,), (0,)), ((), ())),
            preferred_element_type=f32)

    def mm_t(a, b):
        # a @ b.T without an explicit transpose (contract last dims).
        return jax.lax.dot_general(
            a.astype(bf16), b.astype(bf16),
            (((1,), (1,)), ((), ())),
            preferred_element_type=f32)

    def layernorm(x, g, b):
        mu = jnp.mean(x, axis=-1, keepdims=True)
        var = jnp.mean((x - mu) * (x - mu), axis=-1, keepdims=True)
        return (x - mu) * jax.lax.rsqrt(var + LN_EPS) * g + b

    # Block-diagonal additive mask, loaded once (reused by every layer/head).
    mask2d = mask_ref[...]                                   # [B*S, B*S] f32

    h = layernorm(emb_ref[...],
                  pvec_ref[PV_ELN_G:PV_ELN_G + 1, 0:HIDDEN],
                  pvec_ref[PV_ELN_B:PV_ELN_B + 1, 0:HIDDEN])  # [B*S, H] f32

    # --- transformer layers (static Python unroll, everything stays in VMEM) ---
    for li in range(NUM_LAYERS):
        # Fused QKV projection (scale 1/sqrt(D) pre-folded into Q weights).
        qkv = (mm(h, wcat_ref[li, :, 0:3 * HIDDEN])
               + pvec_ref[PV_QKV_B + li:PV_QKV_B + li + 1, 0:3 * HIDDEN])

        attn = None
        for hh in range(NUM_HEADS):
            c0 = hh * HEAD_DIM
            q = qkv[:, c0:c0 + HEAD_DIM]                                  # [B*S, D]
            k = qkv[:, HIDDEN + c0:HIDDEN + c0 + HEAD_DIM]
            v = qkv[:, 2 * HIDDEN + c0:2 * HIDDEN + c0 + HEAD_DIM]

            s = mm_t(q, k) + mask2d                                       # [B*S, B*S]
            m = jnp.max(s, axis=-1, keepdims=True)
            p = jnp.exp(s - m)
            p = p * pl.reciprocal(jnp.sum(p, axis=-1, keepdims=True),
                                  approx=True)
            ctx = mm(p, v)                                                # [B*S, D]
            # Per-head output projection (row slice of Wo) -> no concat.
            part = mm(ctx, wcat_ref[li, c0:c0 + HEAD_DIM,
                                    3 * HIDDEN:4 * HIDDEN])
            attn = part if attn is None else attn + part

        attn = attn + pvec_ref[PV_BO + li:PV_BO + li + 1, 0:HIDDEN]
        h1 = layernorm(attn + h,
                       pvec_ref[PV_LN1_G + li:PV_LN1_G + li + 1, 0:HIDDEN],
                       pvec_ref[PV_LN1_B + li:PV_LN1_B + li + 1, 0:HIDDEN])

        ff = (mm(h1, wcat_ref[li, :, 4 * HIDDEN:4 * HIDDEN + INTERMEDIATE])
              + pvec_ref[PV_B1 + li:PV_B1 + li + 1, 0:INTERMEDIATE])
        # TODO(synk): BERT uses exact erf-GELU; tanh-approx GELU used here for
        # guaranteed Mosaic lowering (deviation ~1e-3 on activations).
        ff = jax.nn.gelu(ff, approximate=True)
        ff2 = (mm(ff, w2_ref[li])
               + pvec_ref[PV_B2 + li:PV_B2 + li + 1, 0:HIDDEN])
        h = layernorm(ff2 + h1,
                      pvec_ref[PV_LN2_G + li:PV_LN2_G + li + 1, 0:HIDDEN],
                      pvec_ref[PV_LN2_B + li:PV_LN2_B + li + 1, 0:HIDDEN])

    # --- pooler ([CLS] token of every sequence via ONE strided read) ---------
    h_scr[...] = h
    cls_tok = h_scr[pl.ds(0, batch, stride=seq), :]                       # [B, H]
    pooled = jnp.tanh(mm(cls_tok, wpc_ref[:, 0:HIDDEN])
                      + pvec_ref[PV_POOL_B:PV_POOL_B + 1, 0:HIDDEN])
    logits = (mm(pooled, wpc_ref[:, HIDDEN:HIDDEN + NUM_LABELS])
              + pvec_ref[PV_CLS_B:PV_CLS_B + 1, 0:NUM_LABELS])            # [B, 2]
    logits_ref[...] = logits

    # --- cross-entropy loss (mean reduction, as nn.CrossEntropyLoss) ---------
    m = jnp.max(logits, axis=-1, keepdims=True)
    lse = m + jnp.log(jnp.sum(jnp.exp(logits - m), axis=-1, keepdims=True))
    nll = -jnp.sum(onehot_ref[...] * (logits - lse), axis=-1, keepdims=True)
    loss_ref[...] = jnp.sum(nll, axis=0, keepdims=True) * (1.0 / batch)   # (1,1)


# --------------------------- parameter init --------------------------------
def init_params(key):
    def nrm(k, shape):
        return jax.random.normal(k, shape, dtype=jnp.float32) * 0.02

    keys = jax.random.split(key, 9)
    ones = lambda s: jnp.ones(s, jnp.float32)
    zeros = lambda s: jnp.zeros(s, jnp.float32)
    return {
        "word_emb": nrm(keys[0], (VOCAB, HIDDEN)),
        "pos_emb": nrm(keys[1], (MAX_POS, HIDDEN)),
        "type_emb": nrm(keys[2], (TYPE_VOCAB, HIDDEN)),
        "emb_ln_g": ones((1, HIDDEN)),
        "emb_ln_b": zeros((1, HIDDEN)),
        # fused QKV weights: [L, H, 3H] (= concat of Wq, Wk, Wv along out dim)
        "qkv_w": nrm(keys[3], (NUM_LAYERS, HIDDEN, 3 * HIDDEN)),
        "qkv_b": zeros((NUM_LAYERS, 1, 3 * HIDDEN)),
        "wo": nrm(keys[4], (NUM_LAYERS, HIDDEN, HIDDEN)),
        "bo": zeros((NUM_LAYERS, 1, HIDDEN)),
        "ln1_g": ones((NUM_LAYERS, 1, HIDDEN)),
        "ln1_b": zeros((NUM_LAYERS, 1, HIDDEN)),
        "w1": nrm(keys[5], (NUM_LAYERS, HIDDEN, INTERMEDIATE)),
        "b1": zeros((NUM_LAYERS, 1, INTERMEDIATE)),
        "w2": nrm(keys[6], (NUM_LAYERS, INTERMEDIATE, HIDDEN)),
        "b2": zeros((NUM_LAYERS, 1, HIDDEN)),
        "ln2_g": ones((NUM_LAYERS, 1, HIDDEN)),
        "ln2_b": zeros((NUM_LAYERS, 1, HIDDEN)),
        "pool_w": nrm(keys[7], (HIDDEN, HIDDEN)),
        "pool_b": zeros((1, HIDDEN)),
        "cls_w": nrm(keys[8], (HIDDEN, NUM_LABELS)),
        "cls_b": zeros((1, NUM_LABELS)),
    }


def pack_params(params):
    """One-time wrapper-side weight prep: fold the 1/sqrt(D) attention scale
    into the Q projection, concatenate weights per matmul-K-dim (bf16 for the
    MXU), and stack every tiny bias/LayerNorm vector into one lane-padded
    [20, 128] f32 array."""
    scale = 1.0 / (HEAD_DIM ** 0.5)
    qkv_w = params["qkv_w"].at[:, :, :HIDDEN].multiply(scale)
    qkv_b = params["qkv_b"].at[:, :, :HIDDEN].multiply(scale)

    # [L, H, 3H + H + I] = [qkv | wo | w1] concatenated along the output dim.
    wcat = jnp.concatenate([qkv_w, params["wo"], params["w1"]],
                           axis=-1).astype(jnp.bfloat16)
    w2 = params["w2"].astype(jnp.bfloat16)
    # [H, H + NUM_LABELS] = [pool_w | cls_w]
    wpc = jnp.concatenate([params["pool_w"], params["cls_w"]],
                          axis=-1).astype(jnp.bfloat16)

    def row(vec):
        vec = vec.reshape(1, -1).astype(jnp.float32)
        return jnp.pad(vec, ((0, 0), (0, PV_WIDTH - vec.shape[1])))

    rows = [row(params["emb_ln_g"]), row(params["emb_ln_b"])]
    rows += [row(qkv_b[li]) for li in range(NUM_LAYERS)]
    rows += [row(params["bo"][li]) for li in range(NUM_LAYERS)]
    rows += [row(params["ln1_g"][li]) for li in range(NUM_LAYERS)]
    rows += [row(params["ln1_b"][li]) for li in range(NUM_LAYERS)]
    rows += [row(params["b1"][li]) for li in range(NUM_LAYERS)]
    rows += [row(params["b2"][li]) for li in range(NUM_LAYERS)]
    rows += [row(params["ln2_g"][li]) for li in range(NUM_LAYERS)]
    rows += [row(params["ln2_b"][li]) for li in range(NUM_LAYERS)]
    rows += [row(params["pool_b"]), row(params["cls_b"])]
    pvec = jnp.concatenate(rows, axis=0)
    assert pvec.shape == (PV_ROWS, PV_WIDTH)

    return {
        "word_emb": params["word_emb"],
        "pos_emb": params["pos_emb"],
        "type_emb": params["type_emb"],
        "wcat": wcat,
        "w2": w2,
        "wpc": wpc,
        "pvec": pvec,
    }


# ------------------------------ forward -------------------------------------
@jax.jit
def forward(packed, input_ids, token_type_ids, attention_mask, labels):
    """Mirrors ModelSeqClassificationConPropJoint.forward -> (loss, logits)."""
    B, S = input_ids.shape
    labels = labels.astype(jnp.int32)  # torch: labels.long()

    # --- embeddings (gather = glue in plain JAX) ---
    # TODO(synk): embedding lookup stays as jnp.take (data-dependent gather).
    emb = (jnp.take(packed["word_emb"], input_ids, axis=0)
           + packed["pos_emb"][:S][None, :, :]
           + jnp.take(packed["type_emb"], token_type_ids, axis=0))
    emb2d = emb.reshape(B * S, HIDDEN).astype(jnp.float32)

    # Block-diagonal additive attention bias over the flattened (B*S) axis:
    # key-padding bias within each sequence, -1e9 across different sequences.
    key_bias = ((1.0 - attention_mask.astype(jnp.float32)) * -1e9).reshape(B * S)
    bids = jnp.arange(B * S, dtype=jnp.int32) // S
    same = bids[:, None] == bids[None, :]
    mask2d = jnp.where(same, key_bias[None, :], jnp.float32(-1e9))        # [B*S, B*S]

    onehot = jax.nn.one_hot(labels, NUM_LABELS, dtype=jnp.float32)

    inputs = (emb2d, mask2d, onehot,
              packed["wcat"], packed["w2"], packed["wpc"], packed["pvec"])

    # NOTE: grid=(1,) single fused call; at realistic (BERT-base) sizes this
    # would need a layer/K grid axis with streamed bf16 weights (v7x VMEM) and
    # a "parallel" batch axis to use both v7x TensorCores.
    logits, loss = pl.pallas_call(
        functools.partial(_fused_forward_kernel, batch=B, seq=S),
        grid=(1,),
        in_specs=[_full_spec(x.shape) for x in inputs],
        out_specs=[_full_spec((B, NUM_LABELS)), _full_spec((1, 1))],
        out_shape=[jax.ShapeDtypeStruct((B, NUM_LABELS), jnp.float32),
                   jax.ShapeDtypeStruct((1, 1), jnp.float32)],
        scratch_shapes=[pltpu.VMEM((B * S, HIDDEN), jnp.float32)],
        compiler_params=pltpu.CompilerParams(
            dimension_semantics=("arbitrary",)),
    )(*inputs)

    return loss[0, 0], logits


# ------------------------------- main ---------------------------------------
if __name__ == "__main__":
    root = jax.random.PRNGKey(0)
    k_param, k_ids, k_type, k_lbl = jax.random.split(root, 4)

    params = init_params(k_param)
    packed = pack_params(params)   # one-time weight prep (outside jit)

    input_ids = jax.random.randint(k_ids, (BATCH, SEQ), 0, VOCAB, dtype=jnp.int32)
    token_type_ids = jax.random.randint(k_type, (BATCH, SEQ), 0, TYPE_VOCAB, dtype=jnp.int32)
    attention_mask = jnp.ones((BATCH, SEQ), dtype=jnp.int32)
    attention_mask = attention_mask.at[1, SEQ - 2:].set(0)          # some padding
    labels = jax.random.randint(k_lbl, (BATCH,), 0, NUM_LABELS, dtype=jnp.int32)

    loss, logits = forward(packed, input_ids, token_type_ids, attention_mask, labels)
    jax.block_until_ready(loss)
    jax.block_until_ready(logits)

    assert logits.shape == (BATCH, NUM_LABELS)
    assert loss.shape == ()
    print("KERNEL_OK")
</pallas_src>

<mosaic_0001>
module attributes {stable_mosaic.version = 11 : i64} {
  func.func @_fused_forward_kernel(%arg0: i32, %arg1: memref<16x32xf32, #tpu.memory_space<vmem>>, %arg2: memref<16x16xf32, #tpu.memory_space<vmem>>, %arg3: memref<2x2xf32, #tpu.memory_space<vmem>>, %arg4: memref<2x32x192xbf16, #tpu.memory_space<vmem>>, %arg5: memref<2x64x32xbf16, #tpu.memory_space<vmem>>, %arg6: memref<32x34xbf16, #tpu.memory_space<vmem>>, %arg7: memref<20x128xf32, #tpu.memory_space<vmem>>, %arg8: memref<2x2xf32, #tpu.memory_space<vmem>>, %arg9: memref<1x1xf32, #tpu.memory_space<vmem>>, %arg10: memref<16x32xf32, #tpu.memory_space<vmem>>) attributes {dimension_semantics = [#tpu.dimension_semantics<arbitrary>], iteration_bounds = array<i64: 1>, scalar_prefetch = 0 : i64, scratch_operands = 1 : i64, tpu.core_type = #tpu.core_type<tc>, window_params = [{pipeline_mode = #tpu.pipeline_mode<synchronous>, transform_indices = @transform_0, window_bounds = array<i64: 16, 32>}, {pipeline_mode = #tpu.pipeline_mode<synchronous>, transform_indices = @transform_1, window_bounds = array<i64: 16, 16>}, {pipeline_mode = #tpu.pipeline_mode<synchronous>, transform_indices = @transform_2, window_bounds = array<i64: 2, 2>}, {pipeline_mode = #tpu.pipeline_mode<synchronous>, transform_indices = @transform_3, window_bounds = array<i64: 2, 32, 192>}, {pipeline_mode = #tpu.pipeline_mode<synchronous>, transform_indices = @transform_4, window_bounds = array<i64: 2, 64, 32>}, {pipeline_mode = #tpu.pipeline_mode<synchronous>, transform_indices = @transform_5, window_bounds = array<i64: 32, 34>}, {pipeline_mode = #tpu.pipeline_mode<synchronous>, transform_indices = @transform_6, window_bounds = array<i64: 20, 128>}, {pipeline_mode = #tpu.pipeline_mode<synchronous>, transform_indices = @transform_7, window_bounds = array<i64: 2, 2>}, {pipeline_mode = #tpu.pipeline_mode<synchronous>, transform_indices = @transform_8, window_bounds = array<i64: 1, 1>}]} {
    %c0 = arith.constant 0 : index
    %c0_0 = arith.constant 0 : index
    %0 = vector.load %arg2[%c0, %c0_0] : memref<16x16xf32, #tpu.memory_space<vmem>>, vector<16x16xf32>
    %c0_1 = arith.constant 0 : index
    %c0_2 = arith.constant 0 : index
    %1 = vector.load %arg1[%c0_1, %c0_2] : memref<16x32xf32, #tpu.memory_space<vmem>>, vector<16x32xf32>
    %c0_3 = arith.constant 0 : index
    %c0_4 = arith.constant 0 : index
    %2 = vector.load %arg7[%c0_3, %c0_4] : memref<20x128xf32, #tpu.memory_space<vmem>>, vector<1x32xf32>
    %c1 = arith.constant 1 : index
    %c0_5 = arith.constant 0 : index
    %3 = vector.load %arg7[%c1, %c0_5] : memref<20x128xf32, #tpu.memory_space<vmem>>, vector<1x32xf32>
    %cst = arith.constant dense<0.000000e+00> : vector<16xf32>
    %4 = vector.multi_reduction <add>, %1, %cst [1] : vector<16x32xf32> to vector<16xf32>
    %5 = vector.shape_cast %4 : vector<16xf32> to vector<16x1xf32>
    %cst_6 = arith.constant 3.200000e+01 : f32
    %6 = vector.broadcast %cst_6 : f32 to vector<16x1xf32>
    %7 = arith.divf %5, %6 : vector<16x1xf32>
    %8 = vector.broadcast %7 : vector<16x1xf32> to vector<16x32xf32>
    %9 = arith.subf %1, %8 : vector<16x32xf32>
    %10 = vector.broadcast %7 : vector<16x1xf32> to vector<16x32xf32>
    %11 = arith.subf %1, %10 : vector<16x32xf32>
    %12 = arith.mulf %9, %11 : vector<16x32xf32>
    %cst_7 = arith.constant dense<0.000000e+00> : vector<16xf32>
    %13 = vector.multi_reduction <add>, %12, %cst_7 [1] : vector<16x32xf32> to vector<16xf32>
    %14 = vector.shape_cast %13 : vector<16xf32> to vector<16x1xf32>
    %cst_8 = arith.constant 3.200000e+01 : f32
    %15 = vector.broadcast %cst_8 : f32 to vector<16x1xf32>
    %16 = arith.divf %14, %15 : vector<16x1xf32>
    %17 = vector.broadcast %7 : vector<16x1xf32> to vector<16x32xf32>
    %18 = arith.subf %1, %17 : vector<16x32xf32>
    %cst_9 = arith.constant 9.99999996E-13 : f32
    %19 = vector.broadcast %cst_9 : f32 to vector<16x1xf32>
    %20 = arith.addf %16, %19 : vector<16x1xf32>
    %21 = math.rsqrt %20 : vector<16x1xf32>
    %22 = vector.broadcast %21 : vector<16x1xf32> to vector<16x32xf32>
    %23 = arith.mulf %18, %22 : vector<16x32xf32>
    %24 = vector.broadcast %2 : vector<1x32xf32> to vector<16x32xf32>
    %25 = arith.mulf %23, %24 : vector<16x32xf32>
    %26 = vector.broadcast %3 : vector<1x32xf32> to vector<16x32xf32>
    %27 = arith.addf %25, %26 : vector<16x32xf32>
    %c0_10 = arith.constant 0 : index
    %c0_11 = arith.constant 0 : index
    %c0_12 = arith.constant 0 : index
    %28 = vector.load %arg4[%c0_10, %c0_11, %c0_12] : memref<2x32x192xbf16, #tpu.memory_space<vmem>>, vector<1x32x96xbf16>
    %29 = vector.shape_cast %28 : vector<1x32x96xbf16> to vector<32x96xbf16>
    %30 = arith.truncf %27 : vector<16x32xf32> to vector<16x32xbf16>
    %cst_13 = arith.constant dense<0.000000e+00> : vector<16x96xf32>
    %31 = tpu.matmul %30, %29, %cst_13 {dimension_numbers = #tpu.dot_dimension_numbers<[1], [0], [0], [1], [0, 0, 1, 1], [], []>} : vector<16x32xbf16>, vector<32x96xbf16>, vector<16x96xf32> -> vector<16x96xf32>
    %c2 = arith.constant 2 : index
    %c0_14 = arith.constant 0 : index
    %32 = vector.load %arg7[%c2, %c0_14] : memref<20x128xf32, #tpu.memory_space<vmem>>, vector<1x96xf32>
    %33 = vector.broadcast %32 : vector<1x96xf32> to vector<16x96xf32>
    %34 = arith.addf %31, %33 : vector<16x96xf32>
    %35 = vector.extract_strided_slice %34 {offsets = [0, 0], sizes = [16, 16], strides = [1, 1]} : vector<16x96xf32> to vector<16x16xf32>
    %36 = vector.extract_strided_slice %34 {offsets = [0, 32], sizes = [16, 16], strides = [1, 1]} : vector<16x96xf32> to vector<16x16xf32>
    %37 = vector.extract_strided_slice %34 {offsets = [0, 64], sizes = [16, 16], strides = [1, 1]} : vector<16x96xf32> to vector<16x16xf32>
    %38 = arith.truncf %35 : vector<16x16xf32> to vector<16x16xbf16>
    %39 = arith.truncf %36 : vector<16x16xf32> to vector<16x16xbf16>
    %cst_15 = arith.constant dense<0.000000e+00> : vector<16x16xf32>
    %40 = tpu.matmul %38, %39, %cst_15 {dimension_numbers = #tpu.dot_dimension_numbers<[1], [1], [0], [0], [0, 0, 1, 0], [], []>} : vector<16x16xbf16>, vector<16x16xbf16>, vector<16x16xf32> -> vector<16x16xf32>
    %41 = arith.addf %40, %0 : vector<16x16xf32>
    %cst_16 = arith.constant dense<0xFF800000> : vector<16xf32>
    %42 = vector.multi_reduction <maximumf>, %41, %cst_16 [1] : vector<16x16xf32> to vector<16xf32>
    %43 = vector.shape_cast %42 : vector<16xf32> to vector<16x1xf32>
    %44 = vector.broadcast %43 : vector<16x1xf32> to vector<16x16xf32>
    %45 = arith.subf %41, %44 : vector<16x16xf32>
    %46 = math.exp %45 : vector<16x16xf32>
    %cst_17 = arith.constant dense<0.000000e+00> : vector<16xf32>
    %47 = vector.multi_reduction <add>, %46, %cst_17 [1] : vector<16x16xf32> to vector<16xf32>
    %48 = vector.shape_cast %47 : vector<16xf32> to vector<16x1xf32>
    %49 = tpu.reciprocal %48 {approx = true} : vector<16x1xf32> -> vector<16x1xf32>
    %50 = vector.broadcast %49 : vector<16x1xf32> to vector<16x16xf32>
    %51 = arith.mulf %46, %50 : vector<16x16xf32>
    %52 = arith.truncf %51 : vector<16x16xf32> to vector<16x16xbf16>
    %53 = arith.truncf %37 : vector<16x16xf32> to vector<16x16xbf16>
    %cst_18 = arith.constant dense<0.000000e+00> : vector<16x16xf32>
    %54 = tpu.matmul %52, %53, %cst_18 {dimension_numbers = #tpu.dot_dimension_numbers<[1], [0], [0], [1], [0, 0, 1, 1], [], []>} : vector<16x16xbf16>, vector<16x16xbf16>, vector<16x16xf32> -> vector<16x16xf32>
    %c0_19 = arith.constant 0 : index
    %c0_20 = arith.constant 0 : index
    %c96 = arith.constant 96 : index
    %55 = vector.load %arg4[%c0_19, %c0_20, %c96] : memref<2x32x192xbf16, #tpu.memory_space<vmem>>, vector<1x16x32xbf16>
    %56 = vector.shape_cast %55 : vector<1x16x32xbf16> to vector<16x32xbf16>
    %57 = arith.truncf %54 : vector<16x16xf32> to vector<16x16xbf16>
    %cst_21 = arith.constant dense<0.000000e+00> : vector<16x32xf32>
    %58 = tpu.matmul %57, %56, %cst_21 {dimension_numbers = #tpu.dot_dimension_numbers<[1], [0], [0], [1], [0, 0, 1, 1], [], []>} : vector<16x16xbf16>, vector<16x32xbf16>, vector<16x32xf32> -> vector<16x32xf32>
    %59 = vector.extract_strided_slice %34 {offsets = [0, 16], sizes = [16, 16], strides = [1, 1]} : vector<16x96xf32> to vector<16x16xf32>
    %60 = vector.extract_strided_slice %34 {offsets = [0, 48], sizes = [16, 16], strides = [1, 1]} : vector<16x96xf32> to vector<16x16xf32>
    %61 = vector.extract_strided_slice %34 {offsets = [0, 80], sizes = [16, 16], strides = [1, 1]} : vector<16x96xf32> to vector<16x16xf32>
    %62 = arith.truncf %59 : vector<16x16xf32> to vector<16x16xbf16>
    %63 = arith.truncf %60 : vector<16x16xf32> to vector<16x16xbf16>
    %cst_22 = arith.constant dense<0.000000e+00> : vector<16x16xf32>
    %64 = tpu.matmul %62, %63, %cst_22 {dimension_numbers = #tpu.dot_dimension_numbers<[1], [1], [0], [0], [0, 0, 1, 0], [], []>} : vector<16x16xbf16>, vector<16x16xbf16>, vector<16x16xf32> -> vector<16x16xf32>
    %65 = arith.addf %64, %0 : vector<16x16xf32>
    %cst_23 = arith.constant dense<0xFF800000> : vector<16xf32>
    %66 = vector.multi_reduction <maximumf>, %65, %cst_23 [1] : vector<16x16xf32> to vector<16xf32>
    %67 = vector.shape_cast %66 : vector<16xf32> to vector<16x1xf32>
    %68 = vector.broadcast %67 : vector<16x1xf32> to vector<16x16xf32>
    %69 = arith.subf %65, %68 : vector<16x16xf32>
    %70 = math.exp %69 : vector<16x16xf32>
    %cst_24 = arith.constant dense<0.000000e+00> : vector<16xf32>
    %71 = vector.multi_reduction <add>, %70, %cst_24 [1] : vector<16x16xf32> to vector<16xf32>
    %72 = vector.shape_cast %71 : vector<16xf32> to vector<16x1xf32>
    %73 = tpu.reciprocal %72 {approx = true} : vector<16x1xf32> -> vector<16x1xf32>
    %74 = vector.broadcast %73 : vector<16x1xf32> to vector<16x16xf32>
    %75 = arith.mulf %70, %74 : vector<16x16xf32>
    %76 = arith.truncf %75 : vector<16x16xf32> to vector<16x16xbf16>
    %77 = arith.truncf %61 : vector<16x16xf32> to vector<16x16xbf16>
    %cst_25 = arith.constant dense<0.000000e+00> : vector<16x16xf32>
    %78 = tpu.matmul %76, %77, %cst_25 {dimension_numbers = #tpu.dot_dimension_numbers<[1], [0], [0], [1], [0, 0, 1, 1], [], []>} : vector<16x16xbf16>, vector<16x16xbf16>, vector<16x16xf32> -> vector<16x16xf32>
    %c0_26 = arith.constant 0 : index
    %c16 = arith.constant 16 : index
    %c96_27 = arith.constant 96 : index
    %79 = vector.load %arg4[%c0_26, %c16, %c96_27] : memref<2x32x192xbf16, #tpu.memory_space<vmem>>, vector<1x16x32xbf16>
    %80 = vector.shape_cast %79 : vector<1x16x32xbf16> to vector<16x32xbf16>
    %81 = arith.truncf %78 : vector<16x16xf32> to vector<16x16xbf16>
    %cst_28 = arith.constant dense<0.000000e+00> : vector<16x32xf32>
    %82 = tpu.matmul %81, %80, %cst_28 {dimension_numbers = #tpu.dot_dimension_numbers<[1], [0], [0], [1], [0, 0, 1, 1], [], []>} : vector<16x16xbf16>, vector<16x32xbf16>, vector<16x32xf32> -> vector<16x32xf32>
    %83 = arith.addf %58, %82 : vector<16x32xf32>
    %c4 = arith.constant 4 : index
    %c0_29 = arith.constant 0 : index
    %84 = vector.load %arg7[%c4, %c0_29] : memref<20x128xf32, #tpu.memory_space<vmem>>, vector<1x32xf32>
    %85 = vector.broadcast %84 : vector<1x32xf32> to vector<16x32xf32>
    %86 = arith.addf %83, %85 : vector<16x32xf32>
    %87 = arith.addf %86, %27 : vector<16x32xf32>
    %c6 = arith.constant 6 : index
    %c0_30 = arith.constant 0 : index
    %88 = vector.load %arg7[%c6, %c0_30] : memref<20x128xf32, #tpu.memory_space<vmem>>, vector<1x32xf32>
    %c8 = arith.constant 8 : index
    %c0_31 = arith.constant 0 : index
    %89 = vector.load %arg7[%c8, %c0_31] : memref<20x128xf32, #tpu.memory_space<vmem>>, vector<1x32xf32>
    %cst_32 = arith.constant dense<0.000000e+00> : vector<16xf32>
    %90 = vector.multi_reduction <add>, %87, %cst_32 [1] : vector<16x32xf32> to vector<16xf32>
    %91 = vector.shape_cast %90 : vector<16xf32> to vector<16x1xf32>
    %cst_33 = arith.constant 3.200000e+01 : f32
    %92 = vector.broadcast %cst_33 : f32 to vector<16x1xf32>
    %93 = arith.divf %91, %92 : vector<16x1xf32>
    %94 = vector.broadcast %93 : vector<16x1xf32> to vector<16x32xf32>
    %95 = arith.subf %87, %94 : vector<16x32xf32>
    %96 = vector.broadcast %93 : vector<16x1xf32> to vector<16x32xf32>
    %97 = arith.subf %87, %96 : vector<16x32xf32>
    %98 = arith.mulf %95, %97 : vector<16x32xf32>
    %cst_34 = arith.constant dense<0.000000e+00> : vector<16xf32>
    %99 = vector.multi_reduction <add>, %98, %cst_34 [1] : vector<16x32xf32> to vector<16xf32>
    %100 = vector.shape_cast %99 : vector<16xf32> to vector<16x1xf32>
    %cst_35 = arith.constant 3.200000e+01 : f32
    %101 = vector.broadcast %cst_35 : f32 to vector<16x1xf32>
    %102 = arith.divf %100, %101 : vector<16x1xf32>
    %103 = vector.broadcast %93 : vector<16x1xf32> to vector<16x32xf32>
    %104 = arith.subf %87, %103 : vector<16x32xf32>
    %cst_36 = arith.constant 9.99999996E-13 : f32
    %105 = vector.broadcast %cst_36 : f32 to vector<16x1xf32>
    %106 = arith.addf %102, %105 : vector<16x1xf32>
    %107 = math.rsqrt %106 : vector<16x1xf32>
    %108 = vector.broadcast %107 : vector<16x1xf32> to vector<16x32xf32>
    %109 = arith.mulf %104, %108 : vector<16x32xf32>
    %110 = vector.broadcast %88 : vector<1x32xf32> to vector<16x32xf32>
    %111 = arith.mulf %109, %110 : vector<16x32xf32>
    %112 = vector.broadcast %89 : vector<1x32xf32> to vector<16x32xf32>
    %113 = arith.addf %111, %112 : vector<16x32xf32>
    %c0_37 = arith.constant 0 : index
    %c0_38 = arith.constant 0 : index
    %c128 = arith.constant 128 : index
    %114 = vector.load %arg4[%c0_37, %c0_38, %c128] : memref<2x32x192xbf16, #tpu.memory_space<vmem>>, vector<1x32x64xbf16>
    %115 = vector.shape_cast %114 : vector<1x32x64xbf16> to vector<32x64xbf16>
    %116 = arith.truncf %113 : vector<16x32xf32> to vector<16x32xbf16>
    %cst_39 = arith.constant dense<0.000000e+00> : vector<16x64xf32>
    %117 = tpu.matmul %116, %115, %cst_39 {dimension_numbers = #tpu.dot_dimension_numbers<[1], [0], [0], [1], [0, 0, 1, 1], [], []>} : vector<16x32xbf16>, vector<32x64xbf16>, vector<16x64xf32> -> vector<16x64xf32>
    %c10 = arith.constant 10 : index
    %c0_40 = arith.constant 0 : index
    %118 = vector.load %arg7[%c10, %c0_40] : memref<20x128xf32, #tpu.memory_space<vmem>>, vector<1x64xf32>
    %119 = vector.broadcast %118 : vector<1x64xf32> to vector<16x64xf32>
    %120 = arith.addf %117, %119 : vector<16x64xf32>
    %121 = arith.mulf %120, %120 : vector<16x64xf32>
    %122 = arith.mulf %120, %121 : vector<16x64xf32>
    %cst_41 = arith.constant 4.471500e-02 : f32
    %123 = vector.broadcast %cst_41 : f32 to vector<16x64xf32>
    %124 = arith.mulf %123, %122 : vector<16x64xf32>
    %125 = arith.addf %120, %124 : vector<16x64xf32>
    %cst_42 = arith.constant 0.797884583 : f32
    %126 = vector.broadcast %cst_42 : f32 to vector<16x64xf32>
    %127 = arith.mulf %126, %125 : vector<16x64xf32>
    %128 = math.tanh %127 : vector<16x64xf32>
    %cst_43 = arith.constant 1.000000e+00 : f32
    %129 = vector.broadcast %cst_43 : f32 to vector<16x64xf32>
    %130 = arith.addf %129, %128 : vector<16x64xf32>
    %cst_44 = arith.constant 5.000000e-01 : f32
    %131 = vector.broadcast %cst_44 : f32 to vector<16x64xf32>
    %132 = arith.mulf %131, %130 : vector<16x64xf32>
    %133 = arith.mulf %120, %132 : vector<16x64xf32>
    %c0_45 = arith.constant 0 : index
    %c0_46 = arith.constant 0 : index
    %c0_47 = arith.constant 0 : index
    %134 = vector.load %arg5[%c0_45, %c0_46, %c0_47] : memref<2x64x32xbf16, #tpu.memory_space<vmem>>, vector<1x64x32xbf16>
    %135 = vector.shape_cast %134 : vector<1x64x32xbf16> to vector<64x32xbf16>
    %136 = arith.truncf %133 : vector<16x64xf32> to vector<16x64xbf16>
    %cst_48 = arith.constant dense<0.000000e+00> : vector<16x32xf32>
    %137 = tpu.matmul %136, %135, %cst_48 {dimension_numbers = #tpu.dot_dimension_numbers<[1], [0], [0], [1], [0, 0, 1, 1], [], []>} : vector<16x64xbf16>, vector<64x32xbf16>, vector<16x32xf32> -> vector<16x32xf32>
    %c12 = arith.constant 12 : index
    %c0_49 = arith.constant 0 : index
    %138 = vector.load %arg7[%c12, %c0_49] : memref<20x128xf32, #tpu.memory_space<vmem>>, vector<1x32xf32>
    %139 = vector.broadcast %138 : vector<1x32xf32> to vector<16x32xf32>
    %140 = arith.addf %137, %139 : vector<16x32xf32>
    %141 = arith.addf %140, %113 : vector<16x32xf32>
    %c14 = arith.constant 14 : index
    %c0_50 = arith.constant 0 : index
    %142 = vector.load %arg7[%c14, %c0_50] : memref<20x128xf32, #tpu.memory_space<vmem>>, vector<1x32xf32>
    %c16_51 = arith.constant 16 : index
    %c0_52 = arith.constant 0 : index
    %143 = vector.load %arg7[%c16_51, %c0_52] : memref<20x128xf32, #tpu.memory_space<vmem>>, vector<1x32xf32>
    %cst_53 = arith.constant dense<0.000000e+00> : vector<16xf32>
    %144 = vector.multi_reduction <add>, %141, %cst_53 [1] : vector<16x32xf32> to vector<16xf32>
    %145 = vector.shape_cast %144 : vector<16xf32> to vector<16x1xf32>
    %cst_54 = arith.constant 3.200000e+01 : f32
    %146 = vector.broadcast %cst_54 : f32 to vector<16x1xf32>
    %147 = arith.divf %145, %146 : vector<16x1xf32>
    %148 = vector.broadcast %147 : vector<16x1xf32> to vector<16x32xf32>
    %149 = arith.subf %141, %148 : vector<16x32xf32>
    %150 = vector.broadcast %147 : vector<16x1xf32> to vector<16x32xf32>
    %151 = arith.subf %141, %150 : vector<16x32xf32>
    %152 = arith.mulf %149, %151 : vector<16x32xf32>
    %cst_55 = arith.constant dense<0.000000e+00> : vector<16xf32>
    %153 = vector.multi_reduction <add>, %152, %cst_55 [1] : vector<16x32xf32> to vector<16xf32>
    %154 = vector.shape_cast %153 : vector<16xf32> to vector<16x1xf32>
    %cst_56 = arith.constant 3.200000e+01 : f32
    %155 = vector.broadcast %cst_56 : f32 to vector<16x1xf32>
    %156 = arith.divf %154, %155 : vector<16x1xf32>
    %157 = vector.broadcast %147 : vector<16x1xf32> to vector<16x32xf32>
    %158 = arith.subf %141, %157 : vector<16x32xf32>
    %cst_57 = arith.constant 9.99999996E-13 : f32
    %159 = vector.broadcast %cst_57 : f32 to vector<16x1xf32>
    %160 = arith.addf %156, %159 : vector<16x1xf32>
    %161 = math.rsqrt %160 : vector<16x1xf32>
    %162 = vector.broadcast %161 : vector<16x1xf32> to vector<16x32xf32>
    %163 = arith.mulf %158, %162 : vector<16x32xf32>
    %164 = vector.broadcast %142 : vector<1x32xf32> to vector<16x32xf32>
    %165 = arith.mulf %163, %164 : vector<16x32xf32>
    %166 = vector.broadcast %143 : vector<1x32xf32> to vector<16x32xf32>
    %167 = arith.addf %165, %166 : vector<16x32xf32>
    %c1_58 = arith.constant 1 : index
    %c0_59 = arith.constant 0 : index
    %c0_60 = arith.constant 0 : index
    %168 = vector.load %arg4[%c1_58, %c0_59, %c0_60] : memref<2x32x192xbf16, #tpu.memory_space<vmem>>, vector<1x32x96xbf16>
    %169 = vector.shape_cast %168 : vector<1x32x96xbf16> to vector<32x96xbf16>
    %170 = arith.truncf %167 : vector<16x32xf32> to vector<16x32xbf16>
    %cst_61 = arith.constant dense<0.000000e+00> : vector<16x96xf32>
    %171 = tpu.matmul %170, %169, %cst_61 {dimension_numbers = #tpu.dot_dimension_numbers<[1], [0], [0], [1], [0, 0, 1, 1], [], []>} : vector<16x32xbf16>, vector<32x96xbf16>, vector<16x96xf32> -> vector<16x96xf32>
    %c3 = arith.constant 3 : index
    %c0_62 = arith.constant 0 : index
    %172 = vector.load %arg7[%c3, %c0_62] : memref<20x128xf32, #tpu.memory_space<vmem>>, vector<1x96xf32>
    %173 = vector.broadcast %172 : vector<1x96xf32> to vector<16x96xf32>
    %174 = arith.addf %171, %173 : vector<16x96xf32>
    %175 = vector.extract_strided_slice %174 {offsets = [0, 0], sizes = [16, 16], strides = [1, 1]} : vector<16x96xf32> to vector<16x16xf32>
    %176 = vector.extract_strided_slice %174 {offsets = [0, 32], sizes = [16, 16], strides = [1, 1]} : vector<16x96xf32> to vector<16x16xf32>
    %177 = vector.extract_strided_slice %174 {offsets = [0, 64], sizes = [16, 16], strides = [1, 1]} : vector<16x96xf32> to vector<16x16xf32>
    %178 = arith.truncf %175 : vector<16x16xf32> to vector<16x16xbf16>
    %179 = arith.truncf %176 : vector<16x16xf32> to vector<16x16xbf16>
    %cst_63 = arith.constant dense<0.000000e+00> : vector<16x16xf32>
    %180 = tpu.matmul %178, %179, %cst_63 {dimension_numbers = #tpu.dot_dimension_numbers<[1], [1], [0], [0], [0, 0, 1, 0], [], []>} : vector<16x16xbf16>, vector<16x16xbf16>, vector<16x16xf32> -> vector<16x16xf32>
    %181 = arith.addf %180, %0 : vector<16x16xf32>
    %cst_64 = arith.constant dense<0xFF800000> : vector<16xf32>
    %182 = vector.multi_reduction <maximumf>, %181, %cst_64 [1] : vector<16x16xf32> to vector<16xf32>
    %183 = vector.shape_cast %182 : vector<16xf32> to vector<16x1xf32>
    %184 = vector.broadcast %183 : vector<16x1xf32> to vector<16x16xf32>
    %185 = arith.subf %181, %184 : vector<16x16xf32>
    %186 = math.exp %185 : vector<16x16xf32>
    %cst_65 = arith.constant dense<0.000000e+00> : vector<16xf32>
    %187 = vector.multi_reduction <add>, %186, %cst_65 [1] : vector<16x16xf32> to vector<16xf32>
    %188 = vector.shape_cast %187 : vector<16xf32> to vector<16x1xf32>
    %189 = tpu.reciprocal %188 {approx = true} : vector<16x1xf32> -> vector<16x1xf32>
    %190 = vector.broadcast %189 : vector<16x1xf32> to vector<16x16xf32>
    %191 = arith.mulf %186, %190 : vector<16x16xf32>
    %192 = arith.truncf %191 : vector<16x16xf32> to vector<16x16xbf16>
    %193 = arith.truncf %177 : vector<16x16xf32> to vector<16x16xbf16>
    %cst_66 = arith.constant dense<0.000000e+00> : vector<16x16xf32>
    %194 = tpu.matmul %192, %193, %cst_66 {dimension_numbers = #tpu.dot_dimension_numbers<[1], [0], [0], [1], [0, 0, 1, 1], [], []>} : vector<16x16xbf16>, vector<16x16xbf16>, vector<16x16xf32> -> vector<16x16xf32>
    %c1_67 = arith.constant 1 : index
    %c0_68 = arith.constant 0 : index
    %c96_69 = arith.constant 96 : index
    %195 = vector.load %arg4[%c1_67, %c0_68, %c96_69] : memref<2x32x192xbf16, #tpu.memory_space<vmem>>, vector<1x16x32xbf16>
    %196 = vector.shape_cast %195 : vector<1x16x32xbf16> to vector<16x32xbf16>
    %197 = arith.truncf %194 : vector<16x16xf32> to vector<16x16xbf16>
    %cst_70 = arith.constant dense<0.000000e+00> : vector<16x32xf32>
    %198 = tpu.matmul %197, %196, %cst_70 {dimension_numbers = #tpu.dot_dimension_numbers<[1], [0], [0], [1], [0, 0, 1, 1], [], []>} : vector<16x16xbf16>, vector<16x32xbf16>, vector<16x32xf32> -> vector<16x32xf32>
    %199 = vector.extract_strided_slice %174 {offsets = [0, 16], sizes = [16, 16], strides = [1, 1]} : vector<16x96xf32> to vector<16x16xf32>
    %200 = vector.extract_strided_slice %174 {offsets = [0, 48], sizes = [16, 16], strides = [1, 1]} : vector<16x96xf32> to vector<16x16xf32>
    %201 = vector.extract_strided_slice %174 {offsets = [0, 80], sizes = [16, 16], strides = [1, 1]} : vector<16x96xf32> to vector<16x16xf32>
    %202 = arith.truncf %199 : vector<16x16xf32> to vector<16x16xbf16>
    %203 = arith.truncf %200 : vector<16x16xf32> to vector<16x16xbf16>
    %cst_71 = arith.constant dense<0.000000e+00> : vector<16x16xf32>
    %204 = tpu.matmul %202, %203, %cst_71 {dimension_numbers = #tpu.dot_dimension_numbers<[1], [1], [0], [0], [0, 0, 1, 0], [], []>} : vector<16x16xbf16>, vector<16x16xbf16>, vector<16x16xf32> -> vector<16x16xf32>
    %205 = arith.addf %204, %0 : vector<16x16xf32>
    %cst_72 = arith.constant dense<0xFF800000> : vector<16xf32>
    %206 = vector.multi_reduction <maximumf>, %205, %cst_72 [1] : vector<16x16xf32> to vector<16xf32>
    %207 = vector.shape_cast %206 : vector<16xf32> to vector<16x1xf32>
    %208 = vector.broadcast %207 : vector<16x1xf32> to vector<16x16xf32>
    %209 = arith.subf %205, %208 : vector<16x16xf32>
    %210 = math.exp %209 : vector<16x16xf32>
    %cst_73 = arith.constant dense<0.000000e+00> : vector<16xf32>
    %211 = vector.multi_reduction <add>, %210, %cst_73 [1] : vector<16x16xf32> to vector<16xf32>
    %212 = vector.shape_cast %211 : vector<16xf32> to vector<16x1xf32>
    %213 = tpu.reciprocal %212 {approx = true} : vector<16x1xf32> -> vector<16x1xf32>
    %214 = vector.broadcast %213 : vector<16x1xf32> to vector<16x16xf32>
    %215 = arith.mulf %210, %214 : vector<16x16xf32>
    %216 = arith.truncf %215 : vector<16x16xf32> to vector<16x16xbf16>
    %217 = arith.truncf %201 : vector<16x16xf32> to vector<16x16xbf16>
    %cst_74 = arith.constant dense<0.000000e+00> : vector<16x16xf32>
    %218 = tpu.matmul %216, %217, %cst_74 {dimension_numbers = #tpu.dot_dimension_numbers<[1], [0], [0], [1], [0, 0, 1, 1], [], []>} : vector<16x16xbf16>, vector<16x16xbf16>, vector<16x16xf32> -> vector<16x16xf32>
    %c1_75 = arith.constant 1 : index
    %c16_76 = arith.constant 16 : index
    %c96_77 = arith.constant 96 : index
    %219 = vector.load %arg4[%c1_75, %c16_76, %c96_77] : memref<2x32x192xbf16, #tpu.memory_space<vmem>>, vector<1x16x32xbf16>
    %220 = vector.shape_cast %219 : vector<1x16x32xbf16> to vector<16x32xbf16>
    %221 = arith.truncf %218 : vector<16x16xf32> to vector<16x16xbf16>
    %cst_78 = arith.constant dense<0.000000e+00> : vector<16x32xf32>
    %222 = tpu.matmul %221, %220, %cst_78 {dimension_numbers = #tpu.dot_dimension_numbers<[1], [0], [0], [1], [0, 0, 1, 1], [], []>} : vector<16x16xbf16>, vector<16x32xbf16>, vector<16x32xf32> -> vector<16x32xf32>
    %223 = arith.addf %198, %222 : vector<16x32xf32>
    %c5 = arith.constant 5 : index
    %c0_79 = arith.constant 0 : index
    %224 = vector.load %arg7[%c5, %c0_79] : memref<20x128xf32, #tpu.memory_space<vmem>>, vector<1x32xf32>
    %225 = vector.broadcast %224 : vector<1x32xf32> to vector<16x32xf32>
    %226 = arith.addf %223, %225 : vector<16x32xf32>
    %227 = arith.addf %226, %167 : vector<16x32xf32>
    %c7 = arith.constant 7 : index
    %c0_80 = arith.constant 0 : index
    %228 = vector.load %arg7[%c7, %c0_80] : memref<20x128xf32, #tpu.memory_space<vmem>>, vector<1x32xf32>
    %c9 = arith.constant 9 : index
    %c0_81 = arith.constant 0 : index
    %229 = vector.load %arg7[%c9, %c0_81] : memref<20x128xf32, #tpu.memory_space<vmem>>, vector<1x32xf32>
    %cst_82 = arith.constant dense<0.000000e+00> : vector<16xf32>
    %230 = vector.multi_reduction <add>, %227, %cst_82 [1] : vector<16x32xf32> to vector<16xf32>
    %231 = vector.shape_cast %230 : vector<16xf32> to vector<16x1xf32>
    %cst_83 = arith.constant 3.200000e+01 : f32
    %232 = vector.broadcast %cst_83 : f32 to vector<16x1xf32>
    %233 = arith.divf %231, %232 : vector<16x1xf32>
    %234 = vector.broadcast %233 : vector<16x1xf32> to vector<16x32xf32>
    %235 = arith.subf %227, %234 : vector<16x32xf32>
    %236 = vector.broadcast %233 : vector<16x1xf32> to vector<16x32xf32>
    %237 = arith.subf %227, %236 : vector<16x32xf32>
    %238 = arith.mulf %235, %237 : vector<16x32xf32>
    %cst_84 = arith.constant dense<0.000000e+00> : vector<16xf32>
    %239 = vector.multi_reduction <add>, %238, %cst_84 [1] : vector<16x32xf32> to vector<16xf32>
    %240 = vector.shape_cast %239 : vector<16xf32> to vector<16x1xf32>
    %cst_85 = arith.constant 3.200000e+01 : f32
    %241 = vector.broadcast %cst_85 : f32 to vector<16x1xf32>
    %242 = arith.divf %240, %241 : vector<16x1xf32>
    %243 = vector.broadcast %233 : vector<16x1xf32> to vector<16x32xf32>
    %244 = arith.subf %227, %243 : vector<16x32xf32>
    %cst_86 = arith.constant 9.99999996E-13 : f32
    %245 = vector.broadcast %cst_86 : f32 to vector<16x1xf32>
    %246 = arith.addf %242, %245 : vector<16x1xf32>
    %247 = math.rsqrt %246 : vector<16x1xf32>
    %248 = vector.broadcast %247 : vector<16x1xf32> to vector<16x32xf32>
    %249 = arith.mulf %244, %248 : vector<16x32xf32>
    %250 = vector.broadcast %228 : vector<1x32xf32> to vector<16x32xf32>
    %251 = arith.mulf %249, %250 : vector<16x32xf32>
    %252 = vector.broadcast %229 : vector<1x32xf32> to vector<16x32xf32>
    %253 = arith.addf %251, %252 : vector<16x32xf32>
    %c1_87 = arith.constant 1 : index
    %c0_88 = arith.constant 0 : index
    %c128_89 = arith.constant 128 : index
    %254 = vector.load %arg4[%c1_87, %c0_88, %c128_89] : memref<2x32x192xbf16, #tpu.memory_space<vmem>>, vector<1x32x64xbf16>
    %255 = vector.shape_cast %254 : vector<1x32x64xbf16> to vector<32x64xbf16>
    %256 = arith.truncf %253 : vector<16x32xf32> to vector<16x32xbf16>
    %cst_90 = arith.constant dense<0.000000e+00> : vector<16x64xf32>
    %257 = tpu.matmul %256, %255, %cst_90 {dimension_numbers = #tpu.dot_dimension_numbers<[1], [0], [0], [1], [0, 0, 1, 1], [], []>} : vector<16x32xbf16>, vector<32x64xbf16>, vector<16x64xf32> -> vector<16x64xf32>
    %c11 = arith.constant 11 : index
    %c0_91 = arith.constant 0 : index
    %258 = vector.load %arg7[%c11, %c0_91] : memref<20x128xf32, #tpu.memory_space<vmem>>, vector<1x64xf32>
    %259 = vector.broadcast %258 : vector<1x64xf32> to vector<16x64xf32>
    %260 = arith.addf %257, %259 : vector<16x64xf32>
    %261 = arith.mulf %260, %260 : vector<16x64xf32>
    %262 = arith.mulf %260, %261 : vector<16x64xf32>
    %cst_92 = arith.constant 4.471500e-02 : f32
    %263 = vector.broadcast %cst_92 : f32 to vector<16x64xf32>
    %264 = arith.mulf %263, %262 : vector<16x64xf32>
    %265 = arith.addf %260, %264 : vector<16x64xf32>
    %cst_93 = arith.constant 0.797884583 : f32
    %266 = vector.broadcast %cst_93 : f32 to vector<16x64xf32>
    %267 = arith.mulf %266, %265 : vector<16x64xf32>
    %268 = math.tanh %267 : vector<16x64xf32>
    %cst_94 = arith.constant 1.000000e+00 : f32
    %269 = vector.broadcast %cst_94 : f32 to vector<16x64xf32>
    %270 = arith.addf %269, %268 : vector<16x64xf32>
    %cst_95 = arith.constant 5.000000e-01 : f32
    %271 = vector.broadcast %cst_95 : f32 to vector<16x64xf32>
    %272 = arith.mulf %271, %270 : vector<16x64xf32>
    %273 = arith.mulf %260, %272 : vector<16x64xf32>
    %c1_96 = arith.constant 1 : index
    %c0_97 = arith.constant 0 : index
    %c0_98 = arith.constant 0 : index
    %274 = vector.load %arg5[%c1_96, %c0_97, %c0_98] : memref<2x64x32xbf16, #tpu.memory_space<vmem>>, vector<1x64x32xbf16>
    %275 = vector.shape_cast %274 : vector<1x64x32xbf16> to vector<64x32xbf16>
    %276 = arith.truncf %273 : vector<16x64xf32> to vector<16x64xbf16>
    %cst_99 = arith.constant dense<0.000000e+00> : vector<16x32xf32>
    %277 = tpu.matmul %276, %275, %cst_99 {dimension_numbers = #tpu.dot_dimension_numbers<[1], [0], [0], [1], [0, 0, 1, 1], [], []>} : vector<16x64xbf16>, vector<64x32xbf16>, vector<16x32xf32> -> vector<16x32xf32>
    %c13 = arith.constant 13 : index
    %c0_100 = arith.constant 0 : index
    %278 = vector.load %arg7[%c13, %c0_100] : memref<20x128xf32, #tpu.memory_space<vmem>>, vector<1x32xf32>
    %279 = vector.broadcast %278 : vector<1x32xf32> to vector<16x32xf32>
    %280 = arith.addf %277, %279 : vector<16x32xf32>
    %281 = arith.addf %280, %253 : vector<16x32xf32>
    %c15 = arith.constant 15 : index
    %c0_101 = arith.constant 0 : index
    %282 = vector.load %arg7[%c15, %c0_101] : memref<20x128xf32, #tpu.memory_space<vmem>>, vector<1x32xf32>
    %c17 = arith.constant 17 : index
    %c0_102 = arith.constant 0 : index
    %283 = vector.load %arg7[%c17, %c0_102] : memref<20x128xf32, #tpu.memory_space<vmem>>, vector<1x32xf32>
    %cst_103 = arith.constant dense<0.000000e+00> : vector<16xf32>
    %284 = vector.multi_reduction <add>, %281, %cst_103 [1] : vector<16x32xf32> to vector<16xf32>
    %285 = vector.shape_cast %284 : vector<16xf32> to vector<16x1xf32>
    %cst_104 = arith.constant 3.200000e+01 : f32
    %286 = vector.broadcast %cst_104 : f32 to vector<16x1xf32>
    %287 = arith.divf %285, %286 : vector<16x1xf32>
    %288 = vector.broadcast %287 : vector<16x1xf32> to vector<16x32xf32>
    %289 = arith.subf %281, %288 : vector<16x32xf32>
    %290 = vector.broadcast %287 : vector<16x1xf32> to vector<16x32xf32>
    %291 = arith.subf %281, %290 : vector<16x32xf32>
    %292 = arith.mulf %289, %291 : vector<16x32xf32>
    %cst_105 = arith.constant dense<0.000000e+00> : vector<16xf32>
    %293 = vector.multi_reduction <add>, %292, %cst_105 [1] : vector<16x32xf32> to vector<16xf32>
    %294 = vector.shape_cast %293 : vector<16xf32> to vector<16x1xf32>
    %cst_106 = arith.constant 3.200000e+01 : f32
    %295 = vector.broadcast %cst_106 : f32 to vector<16x1xf32>
    %296 = arith.divf %294, %295 : vector<16x1xf32>
    %297 = vector.broadcast %287 : vector<16x1xf32> to vector<16x32xf32>
    %298 = arith.subf %281, %297 : vector<16x32xf32>
    %cst_107 = arith.constant 9.99999996E-13 : f32
    %299 = vector.broadcast %cst_107 : f32 to vector<16x1xf32>
    %300 = arith.addf %296, %299 : vector<16x1xf32>
    %301 = math.rsqrt %300 : vector<16x1xf32>
    %302 = vector.broadcast %301 : vector<16x1xf32> to vector<16x32xf32>
    %303 = arith.mulf %298, %302 : vector<16x32xf32>
    %304 = vector.broadcast %282 : vector<1x32xf32> to vector<16x32xf32>
    %305 = arith.mulf %303, %304 : vector<16x32xf32>
    %306 = vector.broadcast %283 : vector<1x32xf32> to vector<16x32xf32>
    %307 = arith.addf %305, %306 : vector<16x32xf32>
    %c0_108 = arith.constant 0 : index
    %c0_109 = arith.constant 0 : index
    %308 = vector.load %arg10[%c0_108, %c0_109] : memref<16x32xf32, #tpu.memory_space<vmem>>, vector<16x32xf32>
    tpu.vector_store %arg10[%c0_108, %c0_109], %307 {strides = array<i32>} : memref<16x32xf32, #tpu.memory_space<vmem>>, vector<16x32xf32>,
    %c0_110 = arith.constant 0 : index
    %c0_111 = arith.constant 0 : index
    %309 = tpu.strided_load %arg10[%c0_110, %c0_111] {strides = array<i32: 8, 1>} : memref<16x32xf32, #tpu.memory_space<vmem>>, vector<2x32xf32>
    %c0_112 = arith.constant 0 : index
    %c0_113 = arith.constant 0 : index
    %310 = vector.load %arg6[%c0_112, %c0_113] : memref<32x34xbf16, #tpu.memory_space<vmem>>, vector<32x32xbf16>
    %311 = arith.truncf %309 : vector<2x32xf32> to vector<2x32xbf16>
    %cst_114 = arith.constant dense<0.000000e+00> : vector<2x32xf32>
    %312 = tpu.matmul %311, %310, %cst_114 {dimension_numbers = #tpu.dot_dimension_numbers<[1], [0], [0], [1], [0, 0, 1, 1], [], []>} : vector<2x32xbf16>, vector<32x32xbf16>, vector<2x32xf32> -> vector<2x32xf32>
    %c18 = arith.constant 18 : index
    %c0_115 = arith.constant 0 : index
    %313 = vector.load %arg7[%c18, %c0_115] : memref<20x128xf32, #tpu.memory_space<vmem>>, vector<1x32xf32>
    %314 = vector.broadcast %313 : vector<1x32xf32> to vector<2x32xf32>
    %315 = arith.addf %312, %314 : vector<2x32xf32>
    %316 = math.tanh %315 : vector<2x32xf32>
    %c0_116 = arith.constant 0 : index
    %c32 = arith.constant 32 : index
    %317 = vector.load %arg6[%c0_116, %c32] : memref<32x34xbf16, #tpu.memory_space<vmem>>, vector<32x2xbf16>
    %318 = arith.truncf %316 : vector<2x32xf32> to vector<2x32xbf16>
    %cst_117 = arith.constant dense<0.000000e+00> : vector<2x2xf32>
    %319 = tpu.matmul %318, %317, %cst_117 {dimension_numbers = #tpu.dot_dimension_numbers<[1], [0], [0], [1], [0, 0, 1, 1], [], []>} : vector<2x32xbf16>, vector<32x2xbf16>, vector<2x2xf32> -> vector<2x2xf32>
    %c19 = arith.constant 19 : index
    %c0_118 = arith.constant 0 : index
    %320 = vector.load %arg7[%c19, %c0_118] : memref<20x128xf32, #tpu.memory_space<vmem>>, vector<1x2xf32>
    %321 = vector.broadcast %320 : vector<1x2xf32> to vector<2x2xf32>
    %322 = arith.addf %319, %321 : vector<2x2xf32>
    %c0_119 = arith.constant 0 : index
    %c0_120 = arith.constant 0 : index
    %323 = vector.load %arg8[%c0_119, %c0_120] : memref<2x2xf32, #tpu.memory_space<vmem>>, vector<2x2xf32>
    tpu.vector_store %arg8[%c0_119, %c0_120], %322 {strides = array<i32>} : memref<2x2xf32, #tpu.memory_space<vmem>>, vector<2x2xf32>,
    %cst_121 = arith.constant dense<0xFF800000> : vector<2xf32>
    %324 = vector.multi_reduction <maximumf>, %322, %cst_121 [1] : vector<2x2xf32> to vector<2xf32>
    %325 = vector.shape_cast %324 : vector<2xf32> to vector<2x1xf32>
    %326 = vector.broadcast %325 : vector<2x1xf32> to vector<2x2xf32>
    %327 = arith.subf %322, %326 : vector<2x2xf32>
    %328 = math.exp %327 : vector<2x2xf32>
    %cst_122 = arith.constant dense<0.000000e+00> : vector<2xf32>
    %329 = vector.multi_reduction <add>, %328, %cst_122 [1] : vector<2x2xf32> to vector<2xf32>
    %330 = vector.shape_cast %329 : vector<2xf32> to vector<2x1xf32>
    %331 = math.log %330 : vector<2x1xf32>
    %332 = arith.addf %325, %331 : vector<2x1xf32>
    %c0_123 = arith.constant 0 : index
    %c0_124 = arith.constant 0 : index
    %333 = vector.load %arg3[%c0_123, %c0_124] : memref<2x2xf32, #tpu.memory_space<vmem>>, vector<2x2xf32>
    %334 = vector.broadcast %332 : vector<2x1xf32> to vector<2x2xf32>
    %335 = arith.subf %322, %334 : vector<2x2xf32>
    %336 = arith.mulf %333, %335 : vector<2x2xf32>
    %cst_125 = arith.constant dense<0.000000e+00> : vector<2xf32>
    %337 = vector.multi_reduction <add>, %336, %cst_125 [1] : vector<2x2xf32> to vector<2xf32>
    %338 = vector.shape_cast %337 : vector<2xf32> to vector<2x1xf32>
    %cst_126 = arith.constant 0.000000e+00 : f32
    %339 = vector.broadcast %cst_126 : f32 to vector<2x1xf32>
    %340 = arith.subf %339, %338 : vector<2x1xf32>
    %cst_127 = arith.constant dense<0.000000e+00> : vector<1xf32>
    %341 = vector.multi_reduction <add>, %340, %cst_127 [0] : vector<2x1xf32> to vector<1xf32>
    %342 = vector.shape_cast %341 : vector<1xf32> to vector<1x1xf32>
    %cst_128 = arith.constant 5.000000e-01 : f32
    %343 = vector.broadcast %cst_128 : f32 to vector<1x1xf32>
    %344 = arith.mulf %342, %343 : vector<1x1xf32>
    %c0_129 = arith.constant 0 : index
    %c0_130 = arith.constant 0 : index
    %345 = vector.load %arg9[%c0_129, %c0_130] : memref<1x1xf32, #tpu.memory_space<vmem>>, vector<1x1xf32>
    tpu.vector_store %arg9[%c0_129, %c0_130], %344 {strides = array<i32>} : memref<1x1xf32, #tpu.memory_space<vmem>>, vector<1x1xf32>,
    return
  }
  func.func @transform_0(%arg0: i32) -> (i32, i32) {
    %c0_i32 = arith.constant 0 : i32
    %c0_i32_0 = arith.constant 0 : i32
    %c0_i32_1 = arith.constant 0 : i32
    return %c0_i32, %c0_i32_0 : i32, i32
  }
  func.func @transform_1(%arg0: i32) -> (i32, i32) {
    %c0_i32 = arith.constant 0 : i32
    %c0_i32_0 = arith.constant 0 : i32
    %c0_i32_1 = arith.constant 0 : i32
    return %c0_i32, %c0_i32_0 : i32, i32
  }
  func.func @transform_2(%arg0: i32) -> (i32, i32) {
    %c0_i32 = arith.constant 0 : i32
    %c0_i32_0 = arith.constant 0 : i32
    %c0_i32_1 = arith.constant 0 : i32
    return %c0_i32, %c0_i32_0 : i32, i32
  }
  func.func @transform_3(%arg0: i32) -> (i32, i32, i32) {
    %c0_i32 = arith.constant 0 : i32
    %c0_i32_0 = arith.constant 0 : i32
    %c0_i32_1 = arith.constant 0 : i32
    %c0_i32_2 = arith.constant 0 : i32
    return %c0_i32, %c0_i32_0, %c0_i32_1 : i32, i32, i32
  }
  func.func @transform_4(%arg0: i32) -> (i32, i32, i32) {
    %c0_i32 = arith.constant 0 : i32
    %c0_i32_0 = arith.constant 0 : i32
    %c0_i32_1 = arith.constant 0 : i32
    %c0_i32_2 = arith.constant 0 : i32
    return %c0_i32, %c0_i32_0, %c0_i32_1 : i32, i32, i32
  }
  func.func @transform_5(%arg0: i32) -> (i32, i32) {
    %c0_i32 = arith.constant 0 : i32
    %c0_i32_0 = arith.constant 0 : i32
    %c0_i32_1 = arith.constant 0 : i32
    return %c0_i32, %c0_i32_0 : i32, i32
  }
  func.func @transform_6(%arg0: i32) -> (i32, i32) {
    %c0_i32 = arith.constant 0 : i32
    %c0_i32_0 = arith.constant 0 : i32
    %c0_i32_1 = arith.constant 0 : i32
    return %c0_i32, %c0_i32_0 : i32, i32
  }
  func.func @transform_7(%arg0: i32) -> (i32, i32) {
    %c0_i32 = arith.constant 0 : i32
    %c0_i32_0 = arith.constant 0 : i32
    %c0_i32_1 = arith.constant 0 : i32
    return %c0_i32, %c0_i32_0 : i32, i32
  }
  func.func @transform_8(%arg0: i32) -> (i32, i32) {
    %c0_i32 = arith.constant 0 : i32
    %c0_i32_0 = arith.constant 0 : i32
    %c0_i32_1 = arith.constant 0 : i32
    return %c0_i32, %c0_i32_0 : i32, i32
  }
}

</mosaic_0001>

<bundles_post_ra>
// kernel: forward.1
= control target key start
LH: loop header
LB: loop body
LE: loop exit
PB: predicated region body
PF: predicated region fallthrough
CT: control target
= control target key end

     0   :  { %14 = vsyncpa [#allocation4], 0  ;;  %vm37_vm0 = vcmask 261120   ;;  %s2417_s0 = inlined_call_operand.vmem [shape: f32[16,32], index: 0, kind: input, shape index: {}]   ;;  %s2418_s1 = inlined_call_operand.vmem [shape: f32[16,16], index: 1, kind: input, shape index: {}]   ;;  %s2419_s2 = inlined_call_operand.vmem [shape: f32[2,2], index: 2, kind: input, shape index: {}]   ;;  %s2420_s3 = inlined_call_operand.vmem [shape: bf16[2,32,192], index: 3, kind: input, shape index: {}]   ;;  %s2421_s4 = inlined_call_operand.vmem [shape: bf16[2,64,32], index: 4, kind: input, shape index: {}]   ;;  %s2422_s5 = inlined_call_operand.vmem [shape: bf16[32,34], index: 5, kind: input, shape index: {}]   ;;  %s2423_s6 = inlined_call_operand.vmem [shape: f32[20,128], index: 6, kind: input, shape index: {}]   ;;  %s2424_s7 = inlined_call_operand.hbm [shape: f32[2,2], index: 7, kind: output, shape index: {0}]   ;;  %s2425_s8 = inlined_call_operand.hbm [shape: f32[1,1], index: 8, kind: output, shape index: {1}]  }
   0x1   :  { %v33_v0 = vld [vmem:[%s2417_s0] sm:$0xff]  ;;  %v34_v1 = vld [vmem:[%s2417_s0 + $0x8] sm:$0xff] }
   0x2   :  { %v38_v2 = vsel %vm37_vm0, %v33_v0, 0.0  ;;  %v41_v3 = vsel %vm37_vm0, %v34_v1, 0.0 }
   0x3   :  { %39 = vadd.xlane.f32.xlu0 %v38_v2 }
   0x7   :  { %42 = vadd.xlane.f32.xlu0 %v41_v3 }
   0x8   :  { %15 = vsyncpa [#allocation6], 0  ;;  %v2083_v14 = vld [vmem:[%s2420_s3 + $0x10] ss:$8 sps:$4 sm:$0xff]   ;;  %v2015_v15 = vmov 0.0   ;;  %vm2016_vm1 = vmmov 0  }
   0x9   :  { %1731 = vmatprep.subr.bf16.mxu0 %v2015_v15  ;;  %1735 = vmatprep.mubr.msk.bf16.mxu0 %vm2016_vm1, %v2015_v15  ;;  %v1886_v16 = vld [vmem:[%s2420_s3] ss:$8 sps:$4 sm:$0xff]   ;;  %s2017_s18 = smov 80   ;;  %s2018_s19 = smov 96   ;;  %vm147_vm2 = vcmask 130048   ;;  %vm660_vm3 = vcmask 523264  }
   0xa   :  { %1732 = vmatpush3.bf16.msra.mxu0 %v2083_v14  ;;  %1739 = vmatprep.subr.bf16.mxu1 %v2015_v15  ;;  %v1601_v25 = vld [vmem:[%s2423_s6] ss:$0 sm:$0xff]  ;;  %v1602_v29 = vld [vmem:[%s2423_s6 + $0x1] ss:$0 sm:$0xff]  ;;  %v1603_v35 = vld [vmem:[%s2423_s6 + $0x2] ss:$0 sm:$0xff] }
   0xb   :  { %1733 = vmatprep.subr.bf16.mxu0 %v2015_v15  ;;  %1741 = vmatprep.mubr.msk.bf16.mxu1 %vm2016_vm1, %v2015_v15  ;;  %s2019_s20 = smov 112   ;;  %v2137_v47 = vld [vmem:[%s2418_s1] sm:$0xff]  ;;  %v2143_v51 = vld [vmem:[%s2418_s1 + $0x8] sm:$0xff]  ;;  %s2020_s1 = smov 64   ;;  %vm1541_vm4 = vcmask 9216  }
   0xc   :  { %s2021_s25 = smov 48   ;;  %s2022_s26 = smov 32  }
   0xe   :  { %1734 = vmatpush3.bf16.msra.mxu0 %v1886_v16 }
   0xf   :  { %1745 = vmatprep.subr.bf16.mxu0 %v2015_v15 }
  0x8c   :  { %v40_v4 = vpop.xlane.xlu0 %39 }
  0x8d   :  { %v45_v5 = vmul.f32 0.03125, %v40_v4 }
  0x8f   :  { %v47_v6 = vsub.f32 %v33_v0, %v45_v5 }
  0x90   :  { %v43_v7 = vpop.xlane.xlu0 %42 }
  0x91   :  { %v46_v8 = vmul.f32 0.03125, %v43_v7  ;;  %v49_v9 = vmul.f32 %v47_v6, %v47_v6 }
  0x93   :  { %v48_v10 = vsub.f32 %v34_v1, %v46_v8  ;;  %v51_v11 = vsel %vm37_vm0, %v49_v9, 0.0 }
  0x94   :  { %52 = vadd.xlane.f32.xlu1 %v51_v11 }
  0x95   :  { %v50_v12 = vmul.f32 %v48_v10, %v48_v10 }
  0x97   :  { %v54_v13 = vsel %vm37_vm0, %v50_v12, 0.0 }
  0x98   :  { %55 = vadd.xlane.f32.xlu1 %v54_v13 }
 0x11d   :  { %v53_v17 = vpop.xlane.xlu1 %52 }
 0x11e   :  { %v57_v18 = vmul.f32 0.03125, %v53_v17 }
 0x120   :  { %v59_v19 = vadd.f32 1e-12, %v57_v18 }
 0x121   :  { %v56_v20 = vpop.xlane.xlu1 %55 }
 0x122   :  { %1905 = vrsqrt.f32 %v59_v19  ;;  %v58_v21 = vmul.f32 0.03125, %v56_v20 }
 0x124   :  { %v60_v22 = vadd.f32 1e-12, %v58_v21 }
 0x126   :  { %1907 = vrsqrt.f32 %v60_v22 }
 0x12f   :  { %v1906_v23 = vpop.eup %1905 }
 0x130   :  { %v63_v24 = vmul.f32 %v1906_v23, %v47_v6  ;;  %v1887_v23 = vld [vmem:[%s2420_s3] ss:$8 sps:$4 sm:$0xff]  }
 0x132   :  { %v69_v28 = vmul.f32 %v1601_v25, %v63_v24 }
 0x133   :  { %v1908_v26 = vpop.eup %1907 }
 0x134   :  { %v64_v27 = vmul.f32 %v1908_v26, %v48_v10  ;;  %v2103_v31 = vadd.f32 %v1602_v29, %v69_v28 }
 0x136   :  { %v70_v30 = vmul.f32 %v1601_v25, %v64_v27 }
 0x138   :  { %v2105_v32 = vadd.f32 %v1602_v29, %v70_v30 }
 0x13a   :  { %v81_v33 = vpack.c.bf16 %v2105_v32, %v2103_v31 }
 0x13c   :  { %1736 = vmatmul.mubr.msk.bf16.vlgmr.msra.gmra.mxu0 %vm37_vm0, %v81_v33 }
 0x13d   :  { %1747 = vmatprep.mubr.msk.bf16.mxu0 %vm2016_vm1, %v2015_v15 }
 0x1fc   :  { %v136_v34 = vpop.f32.mrf.mxu0 }
 0x1fd   :  { %v137_v38 = vadd.f32 %v1603_v35, %v136_v34 }
 0x1fe   :  { %v1737_v36 = vpop.f32.mrf.mxu0 }
 0x200   :  { %v139_v37 = vpop.f32.mrf.mxu0 }
 0x201   :  { %v140_v39 = vadd.f32 %v1603_v35, %v139_v37 }
 0x202   :  { %v1738_v40 = vpop.f32.mrf.mxu0 }
 0x203   :  { %v2115_v41 = vpack.c.bf16 %v140_v39, %v137_v38 }
 0x205   :  { %270 = vrot.lane.b32.xlu1 %v2115_v41, %s2017_s18  ;;  %145 = vrot.lane.b32.xlu0 %v2115_v41, %s2018_s19 }
 0x209   :  { %268 = vrot.lane.b32.xlu1 %v2115_v41, %s2019_s20 }
 0x277   :  { %v146_v42 = vpop.permute.xlu0 %145  ;;  %v271_v44 = vpop.permute.xlu1 %270 }
 0x278   :  { %v152_v43 = vsel %vm147_vm2, %v146_v42, 0  ;;  %v276_v45 = vsel %vm147_vm2, %v271_v44, 0 }
 0x279   :  { %1740 = vmatpush3.bf16.xpose.msra.mxu1 %v152_v43 }
 0x27a   :  { %1751 = vmatprep.subr.bf16.mxu1 %v2015_v15 }
 0x27b   :  { %v269_v46 = vpop.permute.xlu1 %268 }
 0x280   :  { %1742 = vmatmul.mubr.msk.bf16.vlgmr.msra.gmra.mxu1 %vm147_vm2, %v2115_v41 }
 0x281   :  { %1752 = vmatpush3.bf16.xpose.msra.mxu1 %v276_v45  ;;  %1753 = vmatprep.mubr.msk.bf16.mxu1 %vm2016_vm1, %v2015_v15 }
 0x282   :  { %1763 = vmatprep.subr.bf16.mxu1 %v2015_v15 }
 0x288   :  { %1754 = vmatmul.mubr.msk.bf16.vlgmr.msra.gmra.mxu1 %vm147_vm2, %v269_v46 }
 0x289   :  { %1765 = vmatprep.mubr.msk.bf16.mxu1 %vm2016_vm1, %v2015_v15 }
 0x340   :  { %v188_v48 = vpop.f32.mrf.mxu1 }
 0x341   :  { %v189_v49 = vadd.f32 %v188_v48, %v2137_v47 }
 0x342   :  { %v1743_v50 = vpop.f32.mrf.mxu1 }
 0x343   :  { %v195_v52 = vsel %vm147_vm2, %v189_v49, -inf }
 0x344   :  { %v191_v53 = vpop.f32.mrf.mxu1  ;;  %196 = vmax.xlane.f32.xlu1 %v195_v52 }
 0x345   :  { %v192_v54 = vadd.f32 %v191_v53, %v2143_v51 }
 0x346   :  { %v1744_v55 = vpop.f32.mrf.mxu1 }
 0x347   :  { %v198_v56 = vsel %vm147_vm2, %v192_v54, -inf }
 0x348   :  { %v312_v57 = vpop.f32.mrf.mxu1  ;;  %199 = vmax.xlane.f32.xlu0 %v198_v56 }
 0x349   :  { %v313_v58 = vadd.f32 %v312_v57, %v2137_v47 }
 0x34a   :  { %v1755_v59 = vpop.f32.mrf.mxu1 }
 0x34b   :  { %v319_v60 = vsel %vm147_vm2, %v313_v58, -inf }
 0x34c   :  { %v315_v61 = vpop.f32.mrf.mxu1  ;;  %320 = vmax.xlane.f32.xlu0 %v319_v60  ;;  %v1614_v60 = vld [vmem:[%s2423_s6 + $0x4] ss:$0 sm:$0xff] }
 0x34d   :  { %v316_v62 = vadd.f32 %v315_v61, %v2143_v51 }
 0x34e   :  { %v1756_v63 = vpop.f32.mrf.mxu1 }
 0x34f   :  { %v322_v0 = vsel %vm147_vm2, %v316_v62, -inf }
 0x350   :  { %323 = vmax.xlane.f32.xlu0 %v322_v0 }
 0x3cd   :  { %v197_v1 = vpop.xlane.xlu1 %196 }
 0x3ce   :  { %v201_v2 = vsub.f32 %v189_v49, %v197_v1 }
 0x3d0   :  { %v203_v3 = vmul.f32 1.442695, %v201_v2 }
 0x3d1   :  { %v200_v4 = vpop.xlane.xlu0 %199 }
 0x3d2   :  { %1909 = vpow2.f32 %v203_v3  ;;  %v202_v5 = vsub.f32 %v192_v54, %v200_v4 }
 0x3d4   :  { %v205_v6 = vmul.f32 1.442695, %v202_v5 }
 0x3d5   :  { %v321_v7 = vpop.xlane.xlu0 %320 }
 0x3d6   :  { %1911 = vpow2.f32 %v205_v6  ;;  %v325_v8 = vsub.f32 %v313_v58, %v321_v7 }
 0x3d8   :  { %v327_v9 = vmul.f32 1.442695, %v325_v8 }
 0x3d9   :  { %v324_v10 = vpop.xlane.xlu0 %323 }
 0x3da   :  { %1913 = vpow2.f32 %v327_v9  ;;  %v326_v11 = vsub.f32 %v316_v62, %v324_v10 }
 0x3dc   :  { %v329_v12 = vmul.f32 1.442695, %v326_v11 }
 0x3de   :  { %1915 = vpow2.f32 %v329_v12 }
 0x3df   :  { %v1910_v13 = vpop.eup %1909 }
 0x3e0   :  { %v207_v16 = vsel %vm147_vm2, %v1910_v13, 0.0 }
 0x3e1   :  { %208 = vadd.xlane.f32.xlu1 %v207_v16 }
 0x3e3   :  { %v1912_v17 = vpop.eup %1911 }
 0x3e4   :  { %v210_v18 = vsel %vm147_vm2, %v1912_v17, 0.0 }
 0x3e5   :  { %211 = vadd.xlane.f32.xlu0 %v210_v18 }
 0x3e7   :  { %v1914_v19 = vpop.eup %1913 }
 0x3e8   :  { %v331_v20 = vsel %vm147_vm2, %v1914_v19, 0.0 }
 0x3e9   :  { %332 = vadd.xlane.f32.xlu1 %v331_v20 }
 0x3eb   :  { %v1916_v21 = vpop.eup %1915 }
 0x3ec   :  { %v334_v22 = vsel %vm147_vm2, %v1916_v21, 0.0 }
 0x3ed   :  { %335 = vadd.xlane.f32.xlu0 %v334_v22 }
 0x3fa   :  { %218 = vrot.lane.b32.xlu1 %v2115_v41, %s2020_s1 }
 0x3fe   :  { %390 = vrot.lane.b32.xlu1 %v2083_v14, %s2022_s26 }
 0x402   :  { %442 = vrot.lane.b32.xlu1 %v1887_v23, %s2022_s26 }
 0x403   :  { %342 = vrot.lane.b32.xlu0 %v2115_v41, %s2021_s25 }
 0x46a   :  { %v209_v24 = vpop.xlane.xlu1 %208 }
 0x46b   :  { %1917 = vrcp.f32 %v209_v24 }
 0x46e   :  { %v212_v25 = vpop.xlane.xlu0 %211 }
 0x46f   :  { %1919 = vrcp.f32 %v212_v25 }
 0x472   :  { %v333_v26 = vpop.xlane.xlu1 %332 }
 0x473   :  { %1921 = vrcp.f32 %v333_v26 }
 0x476   :  { %v336_v27 = vpop.xlane.xlu0 %335  ;;  %v219_v28 = vpop.permute.xlu1 %218 }
 0x477   :  { %1923 = vrcp.f32 %v336_v27  ;;  %1746 = vmatpush3.bf16.msra.mxu0 %v219_v28  ;;  %v1615_v28 = vld [vmem:[%s2423_s6 + $0x6] ss:$0 sm:$0xff] }
 0x478   :  { %1757 = vmatprep.subr.bf16.mxu0 %v2015_v15  ;;  %v1918_v29 = vpop.eup %1917 }
 0x479   :  { %v215_v33 = vmul.f32 %v1918_v29, %v1910_v13 }
 0x47a   :  { %v391_v30 = vpop.permute.xlu1 %390  ;;  %v343_v36 = vpop.permute.xlu0 %342 }
 0x47b   :  { %1764 = vmatpush3.bf16.msra.mxu1 %v391_v30 }
 0x47c   :  { %v1920_v14 = vpop.eup %1919  ;;  %1775 = vmatprep.subr.bf16.mxu1 %v2015_v15 }
 0x47d   :  { %v216_v34 = vmul.f32 %v1920_v14, %v1912_v17 }
 0x47e   :  { %v443_v42 = vpop.permute.xlu1 %442 }
 0x47f   :  { %v217_v35 = vpack.c.bf16 %v216_v34, %v215_v33  ;;  %v1616_v33 = vld [vmem:[%s2423_s6 + $0x8] ss:$0 sm:$0xff] }
 0x480   :  { %v1922_v37 = vpop.eup %1921 }
 0x481   :  { %1748 = vmatmul.mubr.msk.bf16.vlgmr.msra.gmra.mxu0 %vm147_vm2, %v217_v35  ;;  %v339_v39 = vmul.f32 %v1922_v37, %v1914_v19  ;;  %v1889_v19 = vld [vmem:[%s2420_s3 + $0x4] ss:$8 sps:$4 sm:$0xff]  }
 0x482   :  { %1758 = vmatpush3.bf16.msra.mxu0 %v343_v36  ;;  %1759 = vmatprep.mubr.msk.bf16.mxu0 %vm2016_vm1, %v2015_v15 }
 0x483   :  { %1769 = vmatprep.subr.bf16.mxu0 %v2015_v15 }
 0x484   :  { %v1924_v38 = vpop.eup %1923 }
 0x485   :  { %v340_v40 = vmul.f32 %v1924_v38, %v1916_v21  ;;  %v1890_v38 = vld [vmem:[%s2421_s4 + $0x18] sm:$0xff]  }
 0x487   :  { %v341_v41 = vpack.c.bf16 %v340_v40, %v339_v39  ;;  %v1891_v39 = vld [vmem:[%s2421_s4 + $0x10] sm:$0xff]   ;;  %v1892_v40 = vld [vmem:[%s2421_s4 + $0x8] sm:$0xff]  }
 0x489   :  { %1760 = vmatmul.mubr.msk.bf16.vlgmr.msra.gmra.mxu0 %vm147_vm2, %v341_v41  ;;  %v1893_v41 = vld [vmem:[%s2421_s4] sm:$0xff]  }
 0x48a   :  { %1771 = vmatprep.mubr.msk.bf16.mxu0 %vm2016_vm1, %v2015_v15  ;;  %1770 = vmatpush3.bf16.msra.mxu0 %v443_v42  ;;  %v1617_v42 = vld [vmem:[%s2423_s6 + $0xa] ss:$0 sm:$0xff] }
 0x48b   :  { %1783 = vmatprep.subr.bf16.mxu0 %v2015_v15 }
 0x541   :  { %v258_v43 = vpop.f32.mrf.mxu0 }
 0x543   :  { %v1749_v44 = vpop.f32.mrf.mxu0 }
 0x545   :  { %v261_v45 = vpop.f32.mrf.mxu0 }
 0x546   :  { %v267_v46 = vpack.c.bf16 %v261_v45, %v258_v43 }
 0x547   :  { %v1750_v48 = vpop.f32.mrf.mxu0 }
 0x548   :  { %1772 = vmatmul.mubr.msk.bf16.vlgmr.msra.gmra.mxu0 %vm147_vm2, %v267_v46 }
 0x549   :  { %v382_v49 = vpop.f32.mrf.mxu0  ;;  %1791 = vmatprep.mubr.msk.bf16.mxu0 %vm2016_vm1, %v2015_v15  ;;  %1784 = vmatpush3.bf16.msra.mxu0 %v1890_v38  ;;  %v1627_v38 = vld [vmem:[%s2423_s6 + $0xe] ss:$0 sm:$0xff] }
 0x54a   :  { %1785 = vmatprep.subr.bf16.mxu0 %v2015_v15 }
 0x54b   :  { %v1761_v50 = vpop.f32.mrf.mxu0 }
 0x54d   :  { %v385_v52 = vpop.f32.mrf.mxu0  ;;  %1786 = vmatpush3.bf16.msra.mxu0 %v1891_v39 }
 0x54e   :  { %v389_v53 = vpack.c.bf16 %v385_v52, %v382_v49  ;;  %1787 = vmatprep.subr.bf16.mxu0 %v2015_v15 }
 0x54f   :  { %v1762_v54 = vpop.f32.mrf.mxu0 }
 0x550   :  { %1766 = vmatmul.mubr.msk.bf16.vlgmr.msra.gmra.mxu1 %vm147_vm2, %v389_v53 }
 0x551   :  { %1779 = vmatprep.mubr.msk.bf16.mxu1 %vm2016_vm1, %v2015_v15  ;;  %1788 = vmatpush3.bf16.msra.mxu0 %v1892_v40 }
 0x552   :  { %1789 = vmatprep.subr.bf16.mxu0 %v2015_v15 }
 0x555   :  { %1790 = vmatpush3.bf16.msra.mxu0 %v1893_v41 }
 0x556   :  { %1809 = vmatprep.subr.bf16.mxu0 %v2015_v15 }
 0x608   :  { %v482_v55 = vpop.f32.mrf.mxu0 }
 0x60a   :  { %v1773_v56 = vpop.f32.mrf.mxu0 }
 0x60c   :  { %v485_v57 = vpop.f32.mrf.mxu0 }
 0x60e   :  { %v1774_v58 = vpop.f32.mrf.mxu0 }
 0x610   :  { %v430_v59 = vpop.f32.mrf.mxu1 }
 0x611   :  { %v483_v61 = vadd.f32 %v482_v55, %v430_v59 }
 0x612   :  { %v1767_v62 = vpop.f32.mrf.mxu1 }
 0x613   :  { %v494_v63 = vadd.f32 %v1614_v60, %v483_v61 }
 0x614   :  { %v433_v0 = vpop.f32.mrf.mxu1 }
 0x615   :  { %v486_v1 = vadd.f32 %v485_v57, %v433_v0  ;;  %v496_v2 = vadd.f32 %v494_v63, %v2103_v31 }
 0x616   :  { %v1768_v3 = vpop.f32.mrf.mxu1 }
 0x617   :  { %v495_v4 = vadd.f32 %v1614_v60, %v486_v1  ;;  %v500_v5 = vsel %vm37_vm0, %v496_v2, 0.0 }
 0x618   :  { %501 = vadd.xlane.f32.xlu1 %v500_v5 }
 0x619   :  { %v497_v6 = vadd.f32 %v495_v4, %v2105_v32  ;;  %v1888_v32 = vld [vmem:[%s2420_s3 + $0x14] ss:$8 sps:$4 sm:$0xff]  }
 0x61a   :  { %1776 = vmatpush3.bf16.msra.mxu1 %v1888_v32 }
 0x61b   :  { %v503_v7 = vsel %vm37_vm0, %v497_v6, 0.0  ;;  %1777 = vmatprep.subr.bf16.mxu1 %v2015_v15 }
 0x61c   :  { %504 = vadd.xlane.f32.xlu0 %v503_v7 }
 0x61e   :  { %1778 = vmatpush3.bf16.msra.mxu1 %v1889_v19 }
 0x61f   :  { %1795 = vmatprep.subr.bf16.mxu1 %v2015_v15 }
 0x6a1   :  { %v502_v8 = vpop.xlane.xlu1 %501 }
 0x6a2   :  { %v506_v9 = vmul.f32 0.03125, %v502_v8 }
 0x6a4   :  { %v508_v10 = vsub.f32 %v496_v2, %v506_v9 }
 0x6a5   :  { %v505_v11 = vpop.xlane.xlu0 %504 }
 0x6a6   :  { %v507_v12 = vmul.f32 0.03125, %v505_v11  ;;  %v510_v13 = vmul.f32 %v508_v10, %v508_v10 }
 0x6a8   :  { %v509_v16 = vsub.f32 %v497_v6, %v507_v12  ;;  %v512_v17 = vsel %vm37_vm0, %v510_v13, 0.0  ;;  %v1621_v6 = vld [vmem:[%s2423_s6 + $0xc] ss:$0 sm:$0xff] }
 0x6a9   :  { %513 = vadd.xlane.f32.xlu0 %v512_v17 }
 0x6aa   :  { %v511_v31 = vmul.f32 %v509_v16, %v509_v16 }
 0x6ac   :  { %v515_v18 = vsel %vm37_vm0, %v511_v31, 0.0 }
 0x6ad   :  { %516 = vadd.xlane.f32.xlu0 %v515_v18 }
 0x732   :  { %v514_v20 = vpop.xlane.xlu0 %513 }
 0x733   :  { %v518_v21 = vmul.f32 0.03125, %v514_v20 }
 0x735   :  { %v520_v22 = vadd.f32 1e-12, %v518_v21 }
 0x736   :  { %v517_v23 = vpop.xlane.xlu0 %516 }
 0x737   :  { %1925 = vrsqrt.f32 %v520_v22  ;;  %v519_v24 = vmul.f32 0.03125, %v517_v23 }
 0x739   :  { %v521_v25 = vadd.f32 1e-12, %v519_v24 }
 0x73b   :  { %1927 = vrsqrt.f32 %v521_v25 }
 0x744   :  { %v1926_v26 = vpop.eup %1925 }
 0x745   :  { %v524_v27 = vmul.f32 %v1926_v26, %v508_v10 }
 0x747   :  { %v530_v30 = vmul.f32 %v1615_v28, %v524_v27  ;;  %v2240_v27 = vld [vmem:[%s2420_s3 + $0x30] ss:$8 sps:$4 sm:$0xff]  }
 0x748   :  { %v1928_v29 = vpop.eup %1927 }
 0x749   :  { %v525_v14 = vmul.f32 %v1928_v29, %v509_v16  ;;  %v536_v35 = vadd.f32 %v1616_v33, %v530_v30 }
 0x74b   :  { %v531_v34 = vmul.f32 %v1615_v28, %v525_v14  ;;  %v1895_v28 = vld [vmem:[%s2420_s3 + $0x20] ss:$8 sps:$4 sm:$0xff]  }
 0x74d   :  { %v537_v36 = vadd.f32 %v1616_v33, %v531_v34 }
 0x74f   :  { %v542_v37 = vpack.c.bf16 %v537_v36, %v536_v35 }
 0x751   :  { %1780 = vmatmul.mubr.msk.bf16.vlgmr.msra.gmra.mxu1 %vm37_vm0, %v542_v37 }
 0x752   :  { %1799 = vmatprep.mubr.msk.bf16.mxu1 %vm2016_vm1, %v2015_v15  ;;  %1796 = vmatpush3.bf16.msra.mxu1 %v2240_v27 }
 0x753   :  { %1797 = vmatprep.subr.bf16.mxu1 %v2015_v15 }
 0x756   :  { %1798 = vmatpush3.bf16.msra.mxu1 %v1895_v28 }
 0x757   :  { %1803 = vmatprep.subr.bf16.mxu1 %v2015_v15 }
 0x811   :  { %v597_v43 = vpop.f32.mrf.mxu1 }
 0x812   :  { %v598_v44 = vadd.f32 %v1617_v42, %v597_v43 }
 0x813   :  { %v1781_v45 = vpop.f32.mrf.mxu1 }
 0x814   :  { %v604_v46 = vmul.f32 %v598_v44, %v598_v44 }
 0x815   :  { %v600_v48 = vpop.f32.mrf.mxu1 }
 0x816   :  { %v606_v49 = vmul.f32 %v604_v46, %v598_v44  ;;  %v601_v50 = vadd.f32 %v1617_v42, %v600_v48  ;;  %v1628_v42 = vld [vmem:[%s2423_s6 + $0x10] ss:$0 sm:$0xff] }
 0x817   :  { %v1782_v52 = vpop.f32.mrf.mxu1 }
 0x818   :  { %v608_v53 = vmul.f32 0.044715, %v606_v49  ;;  %v605_v54 = vmul.f32 %v601_v50, %v601_v50  ;;  %v1633_v49 = vld [vmem:[%s2423_s6 + $0x3] ss:$0 sm:$0xff] }
 0x81a   :  { %v610_v55 = vadd.f32 %v608_v53, %v598_v44  ;;  %v607_v56 = vmul.f32 %v605_v54, %v601_v50 }
 0x81c   :  { %v612_v57 = vmul.f32 0.7978846, %v610_v55  ;;  %v609_v58 = vmul.f32 0.044715, %v607_v56 }
 0x81e   :  { %1929 = vtanh.f32 %v612_v57  ;;  %v611_v59 = vadd.f32 %v609_v58, %v601_v50 }
 0x820   :  { %v613_v60 = vmul.f32 0.7978846, %v611_v59 }
 0x822   :  { %1931 = vtanh.f32 %v613_v60 }
 0x82b   :  { %v1930_v61 = vpop.eup %1929 }
 0x82c   :  { %v616_v62 = vadd.f32 1.0, %v1930_v61 }
 0x82e   :  { %v618_v0 = vmul.f32 0.5, %v616_v62 }
 0x82f   :  { %v1932_v63 = vpop.eup %1931 }
 0x830   :  { %v617_v1 = vadd.f32 1.0, %v1932_v63  ;;  %v620_v3 = vmul.f32 %v618_v0, %v598_v44 }
 0x832   :  { %v619_v2 = vmul.f32 0.5, %v617_v1 }
 0x834   :  { %v621_v4 = vmul.f32 %v619_v2, %v601_v50 }
 0x836   :  { %v630_v5 = vpack.c.bf16 %v621_v4, %v620_v3 }
 0x838   :  { %1792 = vmatmul.mubr.msk.bf16.vlgmr.msra.gmra.mxu0 %vm660_vm3, %v630_v5 }
 0x839   :  { %1811 = vmatprep.mubr.msk.bf16.mxu0 %vm2016_vm1, %v2015_v15 }
 0x8f8   :  { %v698_v7 = vpop.f32.mrf.mxu0 }
 0x8f9   :  { %v699_v8 = vadd.f32 %v1621_v6, %v698_v7 }
 0x8fa   :  { %v1793_v9 = vpop.f32.mrf.mxu0 }
 0x8fb   :  { %v705_v10 = vadd.f32 %v699_v8, %v536_v35 }
 0x8fc   :  { %v701_v11 = vpop.f32.mrf.mxu0 }
 0x8fd   :  { %v702_v12 = vadd.f32 %v1621_v6, %v701_v11  ;;  %v709_v13 = vsel %vm37_vm0, %v705_v10, 0.0 }
 0x8fe   :  { %710 = vadd.xlane.f32.xlu1 %v709_v13  ;;  %v1794_v16 = vpop.f32.mrf.mxu0 }
 0x8ff   :  { %v706_v17 = vadd.f32 %v702_v12, %v537_v36 }
 0x901   :  { %v712_v31 = vsel %vm37_vm0, %v706_v17, 0.0 }
 0x902   :  { %713 = vadd.xlane.f32.xlu0 %v712_v31 }
 0x987   :  { %v711_v18 = vpop.xlane.xlu1 %710 }
 0x988   :  { %v715_v32 = vmul.f32 0.03125, %v711_v18 }
 0x98a   :  { %v717_v19 = vsub.f32 %v705_v10, %v715_v32 }
 0x98b   :  { %v714_v20 = vpop.xlane.xlu0 %713 }
 0x98c   :  { %v716_v21 = vmul.f32 0.03125, %v714_v20  ;;  %v719_v22 = vmul.f32 %v717_v19, %v717_v19 }
 0x98e   :  { %v718_v23 = vsub.f32 %v706_v17, %v716_v21  ;;  %v721_v24 = vsel %vm37_vm0, %v719_v22, 0.0 }
 0x98f   :  { %722 = vadd.xlane.f32.xlu1 %v721_v24 }
 0x990   :  { %v720_v25 = vmul.f32 %v718_v23, %v718_v23 }
 0x992   :  { %v724_v26 = vsel %vm37_vm0, %v720_v25, 0.0 }
 0x993   :  { %725 = vadd.xlane.f32.xlu0 %v724_v26 }
 0xa18   :  { %v723_v29 = vpop.xlane.xlu1 %722 }
 0xa19   :  { %v727_v14 = vmul.f32 0.03125, %v723_v29 }
 0xa1b   :  { %v729_v30 = vadd.f32 1e-12, %v727_v14 }
 0xa1c   :  { %v726_v33 = vpop.xlane.xlu0 %725 }
 0xa1d   :  { %1933 = vrsqrt.f32 %v729_v30  ;;  %v728_v34 = vmul.f32 0.03125, %v726_v33 }
 0xa1f   :  { %v730_v35 = vadd.f32 1e-12, %v728_v34  ;;  %v1896_v34 = vld [vmem:[%s2420_s3 + $0x20] ss:$8 sps:$4 sm:$0xff]  }
 0xa21   :  { %1935 = vrsqrt.f32 %v730_v35 }
 0xa2a   :  { %v1934_v36 = vpop.eup %1933 }
 0xa2b   :  { %v733_v37 = vmul.f32 %v1934_v36, %v717_v19 }
 0xa2d   :  { %v739_v41 = vmul.f32 %v1627_v38, %v733_v37 }
 0xa2e   :  { %v1936_v39 = vpop.eup %1935 }
 0xa2f   :  { %v734_v40 = vmul.f32 %v1936_v39, %v718_v23  ;;  %v2254_v44 = vadd.f32 %v1628_v42, %v739_v41 }
 0xa31   :  { %v740_v43 = vmul.f32 %v1627_v38, %v734_v40 }
 0xa33   :  { %v2256_v45 = vadd.f32 %v1628_v42, %v740_v43 }
 0xa35   :  { %v752_v46 = vpack.c.bf16 %v2256_v45, %v2254_v44 }
 0xa37   :  { %1800 = vmatmul.mubr.msk.bf16.vlgmr.msra.gmra.mxu1 %vm37_vm0, %v752_v46 }
 0xa38   :  { %1805 = vmatprep.mubr.msk.bf16.mxu1 %vm2016_vm1, %v2015_v15 }
 0xaf7   :  { %v807_v48 = vpop.f32.mrf.mxu1 }
 0xaf8   :  { %v808_v53 = vadd.f32 %v1633_v49, %v807_v48 }
 0xaf9   :  { %v1801_v50 = vpop.f32.mrf.mxu1 }
 0xafb   :  { %v810_v52 = vpop.f32.mrf.mxu1 }
 0xafc   :  { %v811_v54 = vadd.f32 %v1633_v49, %v810_v52 }
 0xafd   :  { %v1802_v55 = vpop.f32.mrf.mxu1 }
 0xafe   :  { %v2266_v56 = vpack.c.bf16 %v811_v54, %v808_v53 }
 0xb00   :  { %940 = vrot.lane.b32.xlu0 %v2266_v56, %s2017_s18  ;;  %816 = vrot.lane.b32.xlu1 %v2266_v56, %s2018_s19 }
 0xb04   :  { %938 = vrot.lane.b32.xlu1 %v2266_v56, %s2019_s20 }
 0xb72   :  { %v817_v57 = vpop.permute.xlu1 %816  ;;  %v941_v59 = vpop.permute.xlu0 %940 }
 0xb73   :  { %v822_v58 = vsel %vm147_vm2, %v817_v57, 0  ;;  %v946_v60 = vsel %vm147_vm2, %v941_v59, 0 }
 0xb74   :  { %1804 = vmatpush3.bf16.xpose.msra.mxu1 %v822_v58 }
 0xb75   :  { %1815 = vmatprep.subr.bf16.mxu1 %v2015_v15 }
 0xb76   :  { %v939_v61 = vpop.permute.xlu1 %938 }
 0xb7b   :  { %1806 = vmatmul.mubr.msk.bf16.vlgmr.msra.gmra.mxu1 %vm147_vm2, %v2266_v56 }
 0xb7c   :  { %1816 = vmatpush3.bf16.xpose.msra.mxu1 %v946_v60  ;;  %1817 = vmatprep.mubr.msk.bf16.mxu1 %vm2016_vm1, %v2015_v15 }
 0xb7d   :  { %1827 = vmatprep.subr.bf16.mxu1 %v2015_v15 }
 0xb83   :  { %1818 = vmatmul.mubr.msk.bf16.vlgmr.msra.gmra.mxu1 %vm147_vm2, %v939_v61 }
 0xb84   :  { %1829 = vmatprep.mubr.msk.bf16.mxu1 %vm2016_vm1, %v2015_v15 }
 0xc3b   :  { %v858_v62 = vpop.f32.mrf.mxu1 }
 0xc3c   :  { %v859_v63 = vadd.f32 %v858_v62, %v2137_v47 }
 0xc3d   :  { %v1807_v0 = vpop.f32.mrf.mxu1 }
 0xc3e   :  { %v865_v1 = vsel %vm147_vm2, %v859_v63, -inf }
 0xc3f   :  { %866 = vmax.xlane.f32.xlu1 %v865_v1  ;;  %v861_v2 = vpop.f32.mrf.mxu1 }
 0xc40   :  { %v862_v3 = vadd.f32 %v861_v2, %v2143_v51 }
 0xc41   :  { %v1808_v4 = vpop.f32.mrf.mxu1 }
 0xc42   :  { %v868_v5 = vsel %vm147_vm2, %v862_v3, -inf }
 0xc43   :  { %869 = vmax.xlane.f32.xlu0 %v868_v5  ;;  %v982_v6 = vpop.f32.mrf.mxu1 }
 0xc44   :  { %v983_v7 = vadd.f32 %v982_v6, %v2137_v47 }
 0xc45   :  { %v1819_v8 = vpop.f32.mrf.mxu1 }
 0xc46   :  { %v989_v9 = vsel %vm147_vm2, %v983_v7, -inf }
 0xc47   :  { %990 = vmax.xlane.f32.xlu0 %v989_v9  ;;  %v985_v10 = vpop.f32.mrf.mxu1 }
 0xc48   :  { %v986_v11 = vadd.f32 %v985_v10, %v2143_v51 }
 0xc49   :  { %v1820_v12 = vpop.f32.mrf.mxu1 }
 0xc4a   :  { %v992_v13 = vsel %vm147_vm2, %v986_v11, -inf }
 0xc4b   :  { %993 = vmax.xlane.f32.xlu1 %v992_v13 }
 0xcc8   :  { %v867_v16 = vpop.xlane.xlu1 %866 }
 0xcc9   :  { %v871_v17 = vsub.f32 %v859_v63, %v867_v16 }
 0xccb   :  { %v873_v31 = vmul.f32 1.442695, %v871_v17 }
 0xccc   :  { %v870_v18 = vpop.xlane.xlu0 %869 }
 0xccd   :  { %1937 = vpow2.f32 %v873_v31  ;;  %v872_v32 = vsub.f32 %v862_v3, %v870_v18 }
 0xccf   :  { %v875_v19 = vmul.f32 1.442695, %v872_v32 }
 0xcd0   :  { %v991_v20 = vpop.xlane.xlu0 %990 }
 0xcd1   :  { %1939 = vpow2.f32 %v875_v19  ;;  %v995_v47 = vsub.f32 %v983_v7, %v991_v20  ;;  %v1646_v7 = vld [vmem:[%s2423_s6 + $0x5] ss:$0 sm:$0xff] }
 0xcd3   :  { %v997_v21 = vmul.f32 1.442695, %v995_v47 }
 0xcd4   :  { %v994_v22 = vpop.xlane.xlu1 %993 }
 0xcd5   :  { %1941 = vpow2.f32 %v997_v21  ;;  %v996_v23 = vsub.f32 %v986_v11, %v994_v22 }
 0xcd7   :  { %v999_v24 = vmul.f32 1.442695, %v996_v23 }
 0xcd9   :  { %1943 = vpow2.f32 %v999_v24 }
 0xcda   :  { %v1938_v51 = vpop.eup %1937 }
 0xcdb   :  { %v877_v25 = vsel %vm147_vm2, %v1938_v51, 0.0 }
 0xcdc   :  { %878 = vadd.xlane.f32.xlu0 %v877_v25 }
 0xcde   :  { %v1940_v26 = vpop.eup %1939 }
 0xcdf   :  { %v880_v28 = vsel %vm147_vm2, %v1940_v26, 0.0 }
 0xce0   :  { %881 = vadd.xlane.f32.xlu1 %v880_v28 }
 0xce2   :  { %v1942_v29 = vpop.eup %1941 }
 0xce3   :  { %v1001_v14 = vsel %vm147_vm2, %v1942_v29, 0.0 }
 0xce4   :  { %1002 = vadd.xlane.f32.xlu0 %v1001_v14 }
 0xce6   :  { %v1944_v30 = vpop.eup %1943 }
 0xce7   :  { %v1004_v33 = vsel %vm147_vm2, %v1944_v30, 0.0 }
 0xce8   :  { %1005 = vadd.xlane.f32.xlu1 %v1004_v33 }
 0xcf9   :  { %1012 = vrot.lane.b32.xlu1 %v2266_v56, %s2021_s25 }
 0xcfa   :  { %888 = vrot.lane.b32.xlu0 %v2266_v56, %s2020_s1 }
 0xcfd   :  { %1060 = vrot.lane.b32.xlu1 %v2240_v27, %s2022_s26 }
 0xd01   :  { %1112 = vrot.lane.b32.xlu1 %v1896_v34, %s2022_s26 }
 0xd65   :  { %v879_v35 = vpop.xlane.xlu0 %878 }
 0xd66   :  { %1945 = vrcp.f32 %v879_v35 }
 0xd69   :  { %v882_v36 = vpop.xlane.xlu1 %881 }
 0xd6a   :  { %1947 = vrcp.f32 %v882_v36 }
 0xd6d   :  { %v1003_v37 = vpop.xlane.xlu0 %1002 }
 0xd6e   :  { %1949 = vrcp.f32 %v1003_v37  ;;  %v1647_v37 = vld [vmem:[%s2423_s6 + $0x7] ss:$0 sm:$0xff] }
 0xd71   :  { %v889_v38 = vpop.permute.xlu0 %888  ;;  %v1006_v39 = vpop.xlane.xlu1 %1005 }
 0xd72   :  { %1951 = vrcp.f32 %v1006_v39  ;;  %1810 = vmatpush3.bf16.msra.mxu0 %v889_v38 }
 0xd73   :  { %1821 = vmatprep.subr.bf16.mxu0 %v2015_v15  ;;  %v1946_v40 = vpop.eup %1945 }
 0xd74   :  { %v885_v42 = vmul.f32 %v1946_v40, %v1938_v51 }
 0xd75   :  { %v1013_v27 = vpop.permute.xlu1 %1012 }
 0xd77   :  { %v1948_v41 = vpop.eup %1947 }
 0xd78   :  { %v886_v43 = vmul.f32 %v1948_v41, %v1940_v26  ;;  %v1898_v26 = vld [vmem:[%s2420_s3 + $0x24] ss:$8 sps:$4 sm:$0xff]  }
 0xd79   :  { %v1061_v46 = vpop.permute.xlu1 %1060 }
 0xd7a   :  { %v887_v48 = vpack.c.bf16 %v886_v43, %v885_v42  ;;  %1828 = vmatpush3.bf16.msra.mxu1 %v1061_v46 }
 0xd7b   :  { %1839 = vmatprep.subr.bf16.mxu1 %v2015_v15  ;;  %v1950_v49 = vpop.eup %1949 }
 0xd7c   :  { %1812 = vmatmul.mubr.msk.bf16.vlgmr.msra.gmra.mxu0 %vm147_vm2, %v887_v48  ;;  %v1009_v52 = vmul.f32 %v1950_v49, %v1942_v29  ;;  %v1899_v48 = vld [vmem:[%s2421_s4 + $0x38] sm:$0xff]   ;;  %v1900_v49 = vld [vmem:[%s2421_s4 + $0x30] sm:$0xff]  }
 0xd7d   :  { %1822 = vmatpush3.bf16.msra.mxu0 %v1013_v27  ;;  %1823 = vmatprep.mubr.msk.bf16.mxu0 %vm2016_vm1, %v2015_v15  ;;  %v1113_v55 = vpop.permute.xlu1 %1112  ;;  %v1648_v27 = vld [vmem:[%s2423_s6 + $0x9] ss:$0 sm:$0xff] }
 0xd7e   :  { %1833 = vmatprep.subr.bf16.mxu0 %v2015_v15 }
 0xd7f   :  { %v1952_v50 = vpop.eup %1951 }
 0xd80   :  { %v1010_v53 = vmul.f32 %v1952_v50, %v1944_v30  ;;  %v1901_v50 = vld [vmem:[%s2421_s4 + $0x28] sm:$0xff]  }
 0xd82   :  { %v1011_v54 = vpack.c.bf16 %v1010_v53, %v1009_v52  ;;  %v1902_v52 = vld [vmem:[%s2421_s4 + $0x20] sm:$0xff]   ;;  %v1653_v53 = vld [vmem:[%s2423_s6 + $0xb] ss:$0 sm:$0xff] }
 0xd84   :  { %1824 = vmatmul.mubr.msk.bf16.vlgmr.msra.gmra.mxu0 %vm147_vm2, %v1011_v54 }
 0xd85   :  { %1835 = vmatprep.mubr.msk.bf16.mxu0 %vm2016_vm1, %v2015_v15  ;;  %1834 = vmatpush3.bf16.msra.mxu0 %v1113_v55 }
 0xd86   :  { %1847 = vmatprep.subr.bf16.mxu0 %v2015_v15 }
 0xe3c   :  { %v928_v56 = vpop.f32.mrf.mxu0 }
 0xe3e   :  { %v1813_v57 = vpop.f32.mrf.mxu0 }
 0xe40   :  { %v931_v58 = vpop.f32.mrf.mxu0 }
 0xe41   :  { %v937_v59 = vpack.c.bf16 %v931_v58, %v928_v56 }
 0xe42   :  { %v1814_v60 = vpop.f32.mrf.mxu0 }
 0xe43   :  { %1836 = vmatmul.mubr.msk.bf16.vlgmr.msra.gmra.mxu0 %vm147_vm2, %v937_v59 }
 0xe44   :  { %v1052_v61 = vpop.f32.mrf.mxu0  ;;  %1855 = vmatprep.mubr.msk.bf16.mxu0 %vm2016_vm1, %v2015_v15  ;;  %1848 = vmatpush3.bf16.msra.mxu0 %v1899_v48 }
 0xe45   :  { %1849 = vmatprep.subr.bf16.mxu0 %v2015_v15 }
 0xe46   :  { %v1825_v62 = vpop.f32.mrf.mxu0 }
 0xe48   :  { %v1055_v63 = vpop.f32.mrf.mxu0  ;;  %1850 = vmatpush3.bf16.msra.mxu0 %v1900_v49 }
 0xe49   :  { %v1059_v0 = vpack.c.bf16 %v1055_v63, %v1052_v61  ;;  %1851 = vmatprep.subr.bf16.mxu0 %v2015_v15 }
 0xe4a   :  { %v1826_v1 = vpop.f32.mrf.mxu0 }
 0xe4b   :  { %1830 = vmatmul.mubr.msk.bf16.vlgmr.msra.gmra.mxu1 %vm147_vm2, %v1059_v0 }
 0xe4c   :  { %1843 = vmatprep.mubr.msk.bf16.mxu1 %vm2016_vm1, %v2015_v15  ;;  %1852 = vmatpush3.bf16.msra.mxu0 %v1901_v50 }
 0xe4d   :  { %1853 = vmatprep.subr.bf16.mxu0 %v2015_v15 }
 0xe50   :  { %1854 = vmatpush3.bf16.msra.mxu0 %v1902_v52 }
 0xf03   :  { %v1152_v2 = vpop.f32.mrf.mxu0 }
 0xf05   :  { %v1837_v3 = vpop.f32.mrf.mxu0 }
 0xf07   :  { %v1155_v4 = vpop.f32.mrf.mxu0 }
 0xf09   :  { %v1838_v5 = vpop.f32.mrf.mxu0 }
 0xf0b   :  { %v1100_v6 = vpop.f32.mrf.mxu1 }
 0xf0c   :  { %v1153_v8 = vadd.f32 %v1152_v2, %v1100_v6 }
 0xf0d   :  { %v1831_v9 = vpop.f32.mrf.mxu1 }
 0xf0e   :  { %v1164_v10 = vadd.f32 %v1646_v7, %v1153_v8 }
 0xf0f   :  { %v1103_v11 = vpop.f32.mrf.mxu1 }
 0xf10   :  { %v1156_v12 = vadd.f32 %v1155_v4, %v1103_v11  ;;  %v1166_v13 = vadd.f32 %v1164_v10, %v2254_v44 }
 0xf11   :  { %v1832_v16 = vpop.f32.mrf.mxu1 }
 0xf12   :  { %v1165_v17 = vadd.f32 %v1646_v7, %v1156_v12  ;;  %v1170_v31 = vsel %vm37_vm0, %v1166_v13, 0.0 }
 0xf13   :  { %1171 = vadd.xlane.f32.xlu0 %v1170_v31 }
 0xf14   :  { %v1167_v18 = vadd.f32 %v1165_v17, %v2256_v45  ;;  %v1897_v45 = vld [vmem:[%s2420_s3 + $0x34] ss:$8 sps:$4 sm:$0xff]   ;;  %v1665_v17 = vld [vmem:[%s2423_s6 + $0xd] ss:$0 sm:$0xff]  ;;  %s2023_s3 = smov [#allocation3]  }
 0xf15   :  { %1840 = vmatpush3.bf16.msra.mxu1 %v1897_v45  ;;  %s1579_s30 = sshll.u32 %s2023_s3, 4  ;;  %s1580_s30 = int_to_ptr.vmem [resolvable:$true] %s1579_s30 }
 0xf16   :  { %v1173_v32 = vsel %vm37_vm0, %v1167_v18, 0.0  ;;  %1841 = vmatprep.subr.bf16.mxu1 %v2015_v15  ;;  %s1971_s0 = scalar_lea.vmem %s1580_s30, 32  ;;  %p1976_p1 = scmp.lt.s32.totalorder %s1580_s30, %s1580_s30 }
 0xf17   :  { %1174 = vadd.xlane.f32.xlu1 %v1173_v32  ;;  %p1972_p0 = scmp.ne.s32.totalorder %s1580_s30, %s1971_s0  ;;  %p1977_p2 = scmp.lt.s32.totalorder %s1971_s0, %s1971_s0 }
 0xf19   :  { %1842 = vmatpush3.bf16.msra.mxu1 %v1898_v26  ;;  %p1978_p3 = por %p1977_p2, %p1976_p1 }
 0xf1a   :  { %1859 = vmatprep.subr.bf16.mxu1 %v2015_v15 }
 0xf1b   :  { %p1979_p4 = pnand %p1978_p3, %p1972_p0 }
 0xf9c   :  { %v1172_v19 = vpop.xlane.xlu0 %1171 }
 0xf9d   :  { %v1176_v20 = vmul.f32 0.03125, %v1172_v19 }
 0xf9f   :  { %v1178_v47 = vsub.f32 %v1166_v13, %v1176_v20 }
 0xfa0   :  { %v1175_v21 = vpop.xlane.xlu1 %1174 }
 0xfa1   :  { %v1177_v22 = vmul.f32 0.03125, %v1175_v21  ;;  %v1180_v23 = vmul.f32 %v1178_v47, %v1178_v47 }
 0xfa3   :  { %v1179_v24 = vsub.f32 %v1167_v18, %v1177_v22  ;;  %v1182_v51 = vsel %vm37_vm0, %v1180_v23, 0.0 }
 0xfa4   :  { %1183 = vadd.xlane.f32.xlu0 %v1182_v51 }
 0xfa5   :  { %v1181_v44 = vmul.f32 %v1179_v24, %v1179_v24 }
 0xfa7   :  { %v1185_v25 = vsel %vm37_vm0, %v1181_v44, 0.0 }
 0xfa8   :  { %1186 = vadd.xlane.f32.xlu0 %v1185_v25 }
0x102d   :  { %v1184_v28 = vpop.xlane.xlu0 %1183 }
0x102e   :  { %v1188_v29 = vmul.f32 0.03125, %v1184_v28 }
0x1030   :  { %v1190_v14 = vadd.f32 1e-12, %v1188_v29 }
0x1031   :  { %v1187_v30 = vpop.xlane.xlu0 %1186 }
0x1032   :  { %1953 = vrsqrt.f32 %v1190_v14  ;;  %v1189_v33 = vmul.f32 0.03125, %v1187_v30 }
0x1034   :  { %v1191_v34 = vadd.f32 1e-12, %v1189_v33 }
0x1036   :  { %1955 = vrsqrt.f32 %v1191_v34  ;;  %v1903_v34 = vld [vmem:[%s2422_s5 + $0x8] sm:$0xff]  }
0x103f   :  { %v1954_v35 = vpop.eup %1953 }
0x1040   :  { %v1194_v36 = vmul.f32 %v1954_v35, %v1178_v47  ;;  %v1904_v35 = vld [vmem:[%s2422_s5] sm:$0xff]  }
0x1042   :  { %v1200_v40 = vmul.f32 %v1647_v37, %v1194_v36 }
0x1043   :  { %v1956_v38 = vpop.eup %1955 }
0x1044   :  { %v1195_v39 = vmul.f32 %v1956_v38, %v1179_v24  ;;  %v1206_v42 = vadd.f32 %v1648_v27, %v1200_v40 }
0x1046   :  { %v1201_v41 = vmul.f32 %v1647_v37, %v1195_v39 }
0x1048   :  { %v1207_v43 = vadd.f32 %v1648_v27, %v1201_v41 }
0x104a   :  { %v1212_v46 = vpack.c.bf16 %v1207_v43, %v1206_v42 }
0x104c   :  { %1844 = vmatmul.mubr.msk.bf16.vlgmr.msra.gmra.mxu1 %vm37_vm0, %v1212_v46  ;;  %v1672_v46 = vld [vmem:[%s2423_s6 + $0x11] ss:$0 sm:$0xff] }
0x104d   :  { %1863 = vmatprep.mubr.msk.bf16.mxu1 %vm2016_vm1, %v2015_v15  ;;  %1860 = vmatpush3.bf16.msra.mxu1 %v1903_v34 }
0x104e   :  { %1861 = vmatprep.subr.bf16.mxu1 %v2015_v15 }
0x1051   :  { %1862 = vmatpush3.bf16.msra.mxu1 %v1904_v35 }
0x1052   :  { %1867 = vmatprep.subr.bf16.mxu1 %v2015_v15 }
0x110c   :  { %v1267_v54 = vpop.f32.mrf.mxu1 }
0x110d   :  { %v1268_v55 = vadd.f32 %v1653_v53, %v1267_v54 }
0x110e   :  { %v1845_v56 = vpop.f32.mrf.mxu1 }
0x110f   :  { %v1274_v57 = vmul.f32 %v1268_v55, %v1268_v55 }
0x1110   :  { %v1270_v58 = vpop.f32.mrf.mxu1 }
0x1111   :  { %v1276_v59 = vmul.f32 %v1274_v57, %v1268_v55  ;;  %v1271_v60 = vadd.f32 %v1653_v53, %v1270_v58 }
0x1112   :  { %v1846_v61 = vpop.f32.mrf.mxu1 }
0x1113   :  { %v1278_v62 = vmul.f32 0.044715, %v1276_v59  ;;  %v1275_v63 = vmul.f32 %v1271_v60, %v1271_v60  ;;  %v1673_v59 = vld [vmem:[%s2423_s6 + $0x12] ss:$0 sm:$0xff] }
0x1115   :  { %v1280_v0 = vadd.f32 %v1278_v62, %v1268_v55  ;;  %v1277_v1 = vmul.f32 %v1275_v63, %v1271_v60 }
0x1117   :  { %v1282_v2 = vmul.f32 0.7978846, %v1280_v0  ;;  %v1279_v3 = vmul.f32 0.044715, %v1277_v1 }
0x1119   :  { %1957 = vtanh.f32 %v1282_v2  ;;  %v1281_v4 = vadd.f32 %v1279_v3, %v1271_v60 }
0x111b   :  { %v1283_v5 = vmul.f32 0.7978846, %v1281_v4 }
0x111d   :  { %1959 = vtanh.f32 %v1283_v5 }
0x1126   :  { %v1958_v6 = vpop.eup %1957 }
0x1127   :  { %v1286_v7 = vadd.f32 1.0, %v1958_v6 }
0x1129   :  { %v1288_v9 = vmul.f32 0.5, %v1286_v7 }
0x112a   :  { %v1960_v8 = vpop.eup %1959 }
0x112b   :  { %v1287_v10 = vadd.f32 1.0, %v1960_v8  ;;  %v1290_v12 = vmul.f32 %v1288_v9, %v1268_v55 }
0x112d   :  { %v1289_v11 = vmul.f32 0.5, %v1287_v10 }
0x112f   :  { %v1291_v13 = vmul.f32 %v1289_v11, %v1271_v60 }
0x1131   :  { %v1301_v16 = vpack.c.bf16 %v1291_v13, %v1290_v12 }
0x1133   :  { %1856 = vmatmul.mubr.msk.bf16.vlgmr.msra.gmra.mxu0 %vm660_vm3, %v1301_v16 }
0x11f3   :  { %v1368_v31 = vpop.f32.mrf.mxu0 }
0x11f4   :  { %v1369_v18 = vadd.f32 %v1665_v17, %v1368_v31 }
0x11f5   :  { %v1857_v32 = vpop.f32.mrf.mxu0 }
0x11f6   :  { %v1375_v19 = vadd.f32 %v1369_v18, %v1206_v42  ;;  %v1671_v42 = vld [vmem:[%s2423_s6 + $0xf] ss:$0 sm:$0xff]  ;;  %v1555_v32 = vld [vmem:[%s2419_s2] sm:$0x3] }
0x11f7   :  { %v1371_v20 = vpop.f32.mrf.mxu0 }
0x11f8   :  { %v1372_v47 = vadd.f32 %v1665_v17, %v1371_v20  ;;  %v1379_v21 = vsel %vm37_vm0, %v1375_v19, 0.0 }
0x11f9   :  { %1380 = vadd.xlane.f32.xlu0 %v1379_v21  ;;  %v1858_v22 = vpop.f32.mrf.mxu0 }
0x11fa   :  { %v1376_v23 = vadd.f32 %v1372_v47, %v1207_v43 }
0x11fc   :  { %v1382_v24 = vsel %vm37_vm0, %v1376_v23, 0.0 }
0x11fd   :  { %1383 = vadd.xlane.f32.xlu1 %v1382_v24 }
0x1282   :  { %v1381_v51 = vpop.xlane.xlu0 %1380 }
0x1283   :  { %v1385_v44 = vmul.f32 0.03125, %v1381_v51 }
0x1285   :  { %v1387_v25 = vsub.f32 %v1375_v19, %v1385_v44 }
0x1286   :  { %v1384_v45 = vpop.xlane.xlu1 %1383 }
0x1287   :  { %v1386_v26 = vmul.f32 0.03125, %v1384_v45  ;;  %v1389_v28 = vmul.f32 %v1387_v25, %v1387_v25 }
0x1289   :  { %v1388_v29 = vsub.f32 %v1376_v23, %v1386_v26  ;;  %v1391_v14 = vsel %vm37_vm0, %v1389_v28, 0.0 }
0x128a   :  { %1392 = vadd.xlane.f32.xlu0 %v1391_v14 }
0x128b   :  { %v1390_v30 = vmul.f32 %v1388_v29, %v1388_v29 }
0x128d   :  { %v1394_v33 = vsel %vm37_vm0, %v1390_v30, 0.0 }
0x128e   :  { %1395 = vadd.xlane.f32.xlu1 %v1394_v33 }
0x129f   :  { %1492 = vrot.lane.b32.xlu1 %v1904_v35, %s2018_s19 }
0x12a0   :  { %1494 = vrot.lane.b32.xlu0 %v1903_v34, %s2018_s19 }
0x1313   :  { %v1393_v36 = vpop.xlane.xlu0 %1392 }
0x1314   :  { %v1397_v37 = vmul.f32 0.03125, %v1393_v36 }
0x1316   :  { %v1399_v38 = vadd.f32 1e-12, %v1397_v37 }
0x1317   :  { %v1396_v39 = vpop.xlane.xlu1 %1395  ;;  %v1495_v57 = vpop.permute.xlu0 %1494 }
0x1318   :  { %1961 = vrsqrt.f32 %v1399_v38  ;;  %v1398_v40 = vmul.f32 0.03125, %v1396_v39 }
0x131a   :  { %v1400_v27 = vadd.f32 1e-12, %v1398_v40 }
0x131b   :  { %v1493_v58 = vpop.permute.xlu1 %1492 }
0x131c   :  { %1963 = vrsqrt.f32 %v1400_v27 }
0x1325   :  { %v1962_v41 = vpop.eup %1961 }
0x1326   :  { %v1403_v43 = vmul.f32 %v1962_v41, %v1387_v25 }
0x1328   :  { %v1409_v48 = vmul.f32 %v1671_v42, %v1403_v43 }
0x1329   :  { %v1964_v49 = vpop.eup %1963 }
0x132a   :  { %v1415_v50 = vadd.f32 %v1672_v46, %v1409_v48  ;;  %v1404_v52 = vmul.f32 %v1964_v49, %v1388_v29 }
0x132c   :  { %1417 = vst.msk [vmem:[#allocation2] sm:$0xff] %vm37_vm0, %v1415_v50  ;;  %v1410_v53 = vmul.f32 %v1671_v42, %v1404_v52 }
0x132e   :  { %v1416_v54 = vadd.f32 %v1672_v46, %v1410_v53 }
0x1330   :  { %1418 = vst.msk [vmem:[#allocation2 + $0x8] sm:$0xff] %vm37_vm0, %v1416_v54 }
0x1337   :  { %v1419_v55 = vld [vmem:[#allocation2] ss:$8 sm:$0x3] }
0x1338   :  { %v1424_v56 = vpack.c.bf16 %v1419_v55, %v1419_v55 }
0x133a   :  { %1864 = vmatmul.mubr.msk.bf16.vlgmr.msra.gmra.mxu1 %vm37_vm0, %v1424_v56 }
0x133b   :  { %1871 = vmatprep.mubr.msk.bf16.mxu1 %vm2016_vm1, %v2015_v15  ;;  %1868 = vmatpush3.bf16.msra.mxu1 %v1495_v57 }
0x133c   :  { %1869 = vmatprep.subr.bf16.mxu1 %v2015_v15  ;;  %v1677_v15 = vld [vmem:[%s2423_s6 + $0x13] ss:$0 sm:$0xff] }
0x133f   :  { %1870 = vmatpush3.bf16.msra.mxu1 %v1493_v58 }
0x13fa   :  { %v1479_v60 = vpop.f32.mrf.mxu1 }
0x13fb   :  { %v1480_v61 = vadd.f32 %v1673_v59, %v1479_v60 }
0x13fc   :  { %v1865_v62 = vpop.f32.mrf.mxu1 }
0x13fd   :  { %1965 = vtanh.f32 %v1480_v61 }
0x13fe   :  { %v1482_v63 = vpop.f32.mrf.mxu1 }
0x1400   :  { %v1866_v0 = vpop.f32.mrf.mxu1 }
0x140a   :  { %v1966_v1 = vpop.eup %1965 }
0x140b   :  { %v1486_v2 = vpack.c.bf16 %v1966_v1, %v1966_v1 }
0x140d   :  { %1872 = vmatmul.mubr.msk.bf16.vlgmr.msra.gmra.mxu1 %vm37_vm0, %v1486_v2 }
0x14cd   :  { %v1535_v3 = vpop.f32.mrf.mxu1 }
0x14ce   :  { %v1536_v4 = vadd.f32 %v1677_v15, %v1535_v3 }
0x14cf   :  { %v1873_v5 = vpop.f32.mrf.mxu1 }
0x14d0   :  { %v1543_v6 = vsel %vm1541_vm4, %v1536_v4, -inf  ;;  %1542 = vst.msk [vmem:[#allocation3] sm:$0x3] %vm1541_vm4, %v1536_v4 }
0x14d1   :  { %1544 = vmax.xlane.f32.xlu1 %v1543_v6  ;;  %v1538_v7 = vpop.f32.mrf.mxu1 }
0x14d3   :  { %v1874_v8 = vpop.f32.mrf.mxu1 }
0x155a   :  { %v1545_v9 = vpop.xlane.xlu1 %1544 }
0x155b   :  { %v1546_v10 = vsub.f32 %v1536_v4, %v1545_v9 }
0x155d   :  { %v1547_v11 = vmul.f32 1.442695, %v1546_v10 }
0x155f   :  { %1967 = vpow2.f32 %v1547_v11 }
0x156c   :  { %v1968_v12 = vpop.eup %1967 }
0x156d   :  { %v1549_v13 = vsel %vm1541_vm4, %v1968_v12, 0.0 }
0x156e   :  { %1550 = vadd.xlane.f32.xlu0 %v1549_v13 }
0x15f7   :  { %v1551_v16 = vpop.xlane.xlu0 %1550 }
0x15f8   :  { %1969 = vlog2.f32 %v1551_v16 }
0x1605   :  { %v1970_v17 = vpop.eup %1969 }
0x1606   :  { %v1553_v31 = vmul.f32 0.6931472, %v1970_v17 }
0x1608   :  { %v1554_v18 = vadd.f32 %v1553_v31, %v1545_v9 }
0x160a   :  { %v1556_v19 = vsub.f32 %v1536_v4, %v1554_v18 }
0x160c   :  { %v1557_v20 = vmul.f32 %v1556_v19, %v1555_v32 }
0x160e   :  { %v1558_v47 = vsel %vm1541_vm4, %v1557_v20, 0.0 }
0x160f   :  { %1559 = vadd.xlane.f32.xlu0 %v1558_v47 }
0x1610   :  { %1982 = shalt.err (!%p1979_p4)
}
0x1611   :  { %1582 = dma.vmem_to_hbm [thread:$0]  %s1580_s30, 32, %s2424_s7, [#allocation4]   ;;  %vm1562_vm5 = vcmask 1041408   ;;  %vm1571_vm6 = vcmask 0  }
0x1612   :  { %s2024_s2 = smov [#allocation5]  }
0x1613   :  { %s1589_s11 = sshll.u32 %s2024_s2, 4  ;;  %s1590_s11 = int_to_ptr.vmem [resolvable:$true] %s1589_s11 }
0x1614   :  { %s1991_s12 = scalar_lea.vmem %s1590_s11, 16  ;;  %s1995_s13 = scalar_lea.vmem %s1590_s11, 32 }
0x1615   :  { %p1992_p5 = scmp.ne.s32.totalorder %s1590_s11, %s1991_s12  ;;  %p1996_p6 = scmp.lt.s32.totalorder %s1590_s11, %s1590_s11 }
0x1616   :  { %p1997_p7 = scmp.lt.s32.totalorder %s1995_s13, %s1991_s12 }
0x1618   :  { %p1998_p8 = por %p1997_p7, %p1996_p6 }
0x161a   :  { %p1999_p9 = pnand %p1998_p8, %p1992_p5 }
0x1698   :  { %v1560_v21 = vpop.xlane.xlu0 %1559 }
0x1699   :  { %v1561_v22 = vsub.f32 0.0, %v1560_v21 }
0x169b   :  { %v1563_v23 = vsel %vm1562_vm5, %v1561_v22, 0.0 }
0x169c   :  { %v1564_v24 = vrot.slane %v1563_v23, 4 }
0x169e   :  { %v1565_v51 = vadd.f32 %v1564_v24, %v1563_v23 }
0x16a0   :  { %v1566_v44 = vrot.slane %v1565_v51, 2 }
0x16a2   :  { %v1567_v25 = vadd.f32 %v1566_v44, %v1565_v51 }
0x16a4   :  { %v1568_v45 = vrot.slane %v1567_v25, 1 }
0x16a6   :  { %v1569_v26 = vadd.f32 %v1568_v45, %v1567_v25 }
0x16a8   :  { %v1570_v28 = vmul.f32 0.5, %v1569_v26 }
0x16aa   :  { %1572 = vst.msk [vmem:[#allocation5] sm:$0x1] %vm1571_vm6, %v1570_v28 }
0x16ab   :  { %2002 = shalt.err (!%p1999_p9)
}
0x16ac   :  { %1592 = dma.vmem_to_hbm [thread:$0]  %s1590_s11, 16, %s2425_s8, [#allocation6]  }
0x16ad   :  { %2011 = dma.done.wait [#allocation4], 32  }
0x16ae   :  { %2012 = vsyncadd [#allocation4], 4294967264 }
0x16af   :  { %2013 = dma.done.wait [#allocation6], 16  }
0x16b0   :  { %2014 = vsyncadd [#allocation6], 4294967280 }
0x16b1   :  { %1599 = vsyncpa [#allocation4], 1 }
0x16b2   :  { %1600 = vsyncpa [#allocation6], 1 }

</bundles_post_ra>
